<compile_context>
chip_gen: v5e
topology: v5e:2x2
jax: 0.10.0
libtpu: 0.0.40
codegen_flags: <defaults>
</compile_context>

<pallas_src>
import numpy as np
import jax
import jax.numpy as jnp
from jax import lax
from jax.experimental import pallas as pl
from jax.experimental.pallas import tpu as pltpu

# ----- scaled-down ViT-base config so the demo runs at small shapes -----------
IMG = 32            # 224 in google/vit-base-patch16-224-in21k
PATCH = 16
CHANNELS = 3
HIDDEN = 32         # 768 in ViT-base
LAYERS = 2          # 12 in ViT-base
HEADS = 2           # 12 in ViT-base
HEAD_DIM = HIDDEN // HEADS
INTERMEDIATE = 64   # 3072 in ViT-base
NUM_LABELS = 10
NUTRITION_HIDDEN = 256   # nn.Linear(num_labels, 256)
NUTRITION_OUT = 5        # nn.Linear(256, 5)
LN_EPS = 1e-12           # HF ViT layer_norm_eps

NUM_PATCHES = (IMG // PATCH) ** 2
SEQ = NUM_PATCHES + 1    # +1 CLS token
SEQ_PAD = 8              # sublane-aligned sequence length (pad tokens masked)
PATCH_DIM = CHANNELS * PATCH * PATCH

LOGITS_PAD = 128         # lane-dense classifier output width
OUT_PAD = 128            # lane-dense nutrition output width
NUT_IN_PAD = 16          # padded contraction dim for logits -> nutrition
VEC_W = 256              # width of the packed gain/bias slab
VEC_ROWS_PER_LAYER = 8   # ln1_g, ln1_b, qkv_b, o_b, ln2_g, ln2_b, fc1_b, fc2_b

assert SEQ_PAD >= SEQ and SEQ_PAD % 8 == 0


# --------------------------- fused forward kernel -----------------------------
def _fwd_kernel(
    tokens_ref, emb_bias_ref, mask_ref,
    patch_w_ref, qkv_w_ref, o_w_ref, fc1_w_ref, fc2_w_ref,
    vec_ref, cls_w_ref, nut1_w_ref, nut2_w_ref,
    logits_ref, nut_ref,
):
    f32 = jnp.float32
    bf16 = jnp.bfloat16
    rows = tokens_ref.shape[0]           # B * SEQ_PAD
    batch = logits_ref.shape[0]
    scale = 1.0 / float(HEAD_DIM) ** 0.5

    def vrow(r, width):                  # one packed gain/bias row -> (1, width)
        return vec_ref[r:r + 1, :width]

    def layer_norm(x, g, b):
        mu = jnp.mean(x, axis=-1, keepdims=True)
        var = jnp.mean(jnp.square(x - mu), axis=-1, keepdims=True)
        return (x - mu) * lax.rsqrt(var + LN_EPS) * g + b

    def gelu_erf(x):
        # Exact-erf GELU via Abramowitz & Stegun 7.1.26 (|abs err| < 1.5e-7),
        # built only from mul/add/exp/where so it lowers on every TPU gen.
        z = x * 0.7071067811865476
        az = jnp.abs(z)
        t = 1.0 / (1.0 + 0.3275911 * az)
        poly = ((((1.061405429 * t - 1.453152027) * t + 1.421413741) * t
                 - 0.284496736) * t + 0.254829592) * t
        erf_abs = 1.0 - poly * jnp.exp(-az * az)
        erf_z = jnp.where(z < 0.0, -erf_abs, erf_abs)
        return 0.5 * x * (1.0 + erf_z)

    # Block-diagonal attention mask over the head-stacked layout (precomputed
    # in the wrapper): 0 on the same (head, batch) 8-row block & valid key
    # columns, -1e30 elsewhere.
    attn_mask = mask_ref[...]

    # ---- patch embedding: Conv2d(stride=16) == matmul; CLS/pos/bias folded
    # into emb_bias (pad rows are all-zero and stay zero). --------------------
    x = jnp.dot(tokens_ref[...], patch_w_ref[...],
                preferred_element_type=f32) + emb_bias_ref[...]

    for l in range(LAYERS):
        base = l * VEC_ROWS_PER_LAYER

        # --- self-attention block (pre-LN, residual) ---
        h = layer_norm(x, vrow(base + 0, HIDDEN), vrow(base + 1, HIDDEN))
        qkv = jnp.dot(h.astype(bf16), qkv_w_ref[l],
                      preferred_element_type=f32) + vrow(base + 2, 3 * HIDDEN)

        # Head-stack Q/K/V: (B*8, HEADS*HD) -> (HEADS*B*8, HD), rows (head,b,s).
        def stack_heads(off):
            return jnp.concatenate(
                [qkv[:, off + hd * HEAD_DIM: off + (hd + 1) * HEAD_DIM]
                 for hd in range(HEADS)], axis=0)

        q_st = stack_heads(0)
        k_st = stack_heads(HIDDEN)
        v_st = stack_heads(2 * HIDDEN)

        # One block-diagonal score matmul for all (batch, head) pairs.
        s = lax.dot_general(q_st.astype(bf16), k_st.astype(bf16),
                            (((1,), (1,)), ((), ())),
                            preferred_element_type=f32)
        s = s * scale + attn_mask
        s = s - jnp.max(s, axis=-1, keepdims=True)
        p = jnp.exp(s)
        p = p * pl.reciprocal(jnp.sum(p, axis=-1, keepdims=True), approx=True)
        o_st = jnp.dot(p.astype(bf16), v_st.astype(bf16),
                       preferred_element_type=f32)      # (HEADS*B*8, HD)

        # Output projection folded per head (all slices 8/16-row aligned):
        # concat(heads) @ Wo == sum_h O_h @ Wo[h*HD:(h+1)*HD, :]
        o_w_l = o_w_ref[l]                               # (HIDDEN, HIDDEN) bf16
        attn = None
        for hd in range(HEADS):
            oh = o_st[hd * rows:(hd + 1) * rows, :]
            c = jnp.dot(oh.astype(bf16),
                        o_w_l[hd * HEAD_DIM:(hd + 1) * HEAD_DIM, :],
                        preferred_element_type=f32)
            attn = c if attn is None else attn + c
        x = x + attn + vrow(base + 3, HIDDEN)

        # --- MLP block (pre-LN, residual) ---
        h = layer_norm(x, vrow(base + 4, HIDDEN), vrow(base + 5, HIDDEN))
        h = jnp.dot(h.astype(bf16), fc1_w_ref[l],
                    preferred_element_type=f32) + vrow(base + 6, INTERMEDIATE)
        h = gelu_erf(h)
        h = jnp.dot(h.astype(bf16), fc2_w_ref[l],
                    preferred_element_type=f32) + vrow(base + 7, HIDDEN)
        x = x + h

    # ---- gather all CLS rows with one selection matmul, final LN, classify --
    fin = LAYERS * VEC_ROWS_PER_LAYER
    rb = lax.broadcasted_iota(jnp.int32, (batch, rows), 0)
    cb = lax.broadcasted_iota(jnp.int32, (batch, rows), 1)
    sel = jnp.where(cb == rb * SEQ_PAD, 1.0, 0.0).astype(f32)   # picks rows b*8
    cls = jnp.dot(sel, x, preferred_element_type=f32)           # (B, HIDDEN)
    cls = layer_norm(cls, vrow(fin + 0, HIDDEN), vrow(fin + 1, HIDDEN))

    # Lane-dense logits: cls_w / cls_b are zero-padded to 128 cols in wrapper.
    logits = jnp.dot(cls, cls_w_ref[...],
                     preferred_element_type=f32) + vrow(fin + 2, LOGITS_PAD)
    logits_ref[...] = logits

    # nutrition_head: Linear(num_labels, 256) -> ReLU -> Linear(256, 5),
    # fed from the in-register logits (padded columns are exactly zero).
    nut = jnp.dot(logits[:, :NUT_IN_PAD], nut1_w_ref[...],
                  preferred_element_type=f32) + vrow(fin + 3, NUTRITION_HIDDEN)
    nut = jnp.maximum(nut, 0.0)
    nut_ref[...] = jnp.dot(nut, nut2_w_ref[...],
                           preferred_element_type=f32) + vrow(fin + 4, OUT_PAD)


# ------------------------- deterministic parameters ---------------------------
def init_params(key):
    keys = iter(jax.random.split(key, 40))

    def w(shape, scale=0.02):
        return jax.random.normal(next(keys), shape, jnp.float32) * scale

    p = {}
    # patch embedding == Conv2d(3, HIDDEN, 16, stride=16), flattened (C, ph, pw)
    p["patch_w"] = w((PATCH_DIM, HIDDEN))
    p["patch_b"] = w((HIDDEN,))
    p["cls"] = w((1, HIDDEN))
    p["pos"] = w((SEQ, HIDDEN))
    p["ln1_g"] = jnp.ones((LAYERS, HIDDEN), jnp.float32)
    p["ln1_b"] = w((LAYERS, HIDDEN))
    p["qkv_w"] = w((LAYERS, HIDDEN, 3 * HIDDEN))     # Q|K|V fused along cols
    p["qkv_b"] = w((LAYERS, 3 * HIDDEN))
    p["o_w"] = w((LAYERS, HIDDEN, HIDDEN))
    p["o_b"] = w((LAYERS, HIDDEN))
    p["ln2_g"] = jnp.ones((LAYERS, HIDDEN), jnp.float32)
    p["ln2_b"] = w((LAYERS, HIDDEN))
    p["fc1_w"] = w((LAYERS, HIDDEN, INTERMEDIATE))
    p["fc1_b"] = w((LAYERS, INTERMEDIATE))
    p["fc2_w"] = w((LAYERS, INTERMEDIATE, HIDDEN))
    p["fc2_b"] = w((LAYERS, HIDDEN))
    p["lnf_g"] = jnp.ones((HIDDEN,), jnp.float32)
    p["lnf_b"] = w((HIDDEN,))
    p["cls_w"] = w((HIDDEN, NUM_LABELS))
    p["cls_b"] = w((NUM_LABELS,))
    p["nut1_w"] = w((NUM_LABELS, NUTRITION_HIDDEN))
    p["nut1_b"] = w((NUTRITION_HIDDEN,))
    p["nut2_w"] = w((NUTRITION_HIDDEN, NUTRITION_OUT))
    p["nut2_b"] = w((NUTRITION_OUT,))
    return p


# --------------------------------- wrapper ------------------------------------
def _build_attn_mask(batch):
    """Block-diagonal mask for the head-stacked (HEADS*B*8, HEAD_DIM) layout."""
    nr = HEADS * batch * SEQ_PAD
    blk = np.arange(nr) // SEQ_PAD
    same = blk[:, None] == blk[None, :]
    key_ok = (np.arange(nr) % SEQ_PAD) < SEQ
    return jnp.asarray(np.where(same & key_ok[None, :], 0.0, -1e30),
                       dtype=jnp.float32)


def _vec_row(v):
    v = jnp.asarray(v, jnp.float32).reshape(-1)
    return jnp.pad(v, (0, VEC_W - v.shape[0]))


def forward(params, pixel_values):
    """pixel_values: (B, C, H, W) NCHW float32. Returns logits + nutrition_pred."""
    B = pixel_values.shape[0]
    gh = IMG // PATCH
    bf = jnp.bfloat16

    # Patchify (layout glue): (B,C,H,W) -> (B, P, C*ph*pw); prepend a zero "CLS
    # pixel row" and SEQ_PAD-SEQ zero pad rows per batch element.
    patches = pixel_values.reshape(B, CHANNELS, gh, PATCH, gh, PATCH)
    patches = patches.transpose(0, 2, 4, 1, 3, 5).reshape(B, NUM_PATCHES, PATCH_DIM)
    tokens = jnp.concatenate(
        [jnp.zeros((B, 1, PATCH_DIM), jnp.float32), patches,
         jnp.zeros((B, SEQ_PAD - SEQ, PATCH_DIM), jnp.float32)], axis=1)
    tokens = tokens.reshape(B * SEQ_PAD, PATCH_DIM).astype(bf)

    # Per-row embedding bias: row 0 = cls + pos[0]; rows 1..NP = patch_b + pos;
    # pad rows = 0 (they stay exactly zero after the embedding matmul).
    emb = jnp.concatenate(
        [params["cls"] + params["pos"][0:1],
         params["patch_b"][None, :] + params["pos"][1:],
         jnp.zeros((SEQ_PAD - SEQ, HIDDEN), jnp.float32)], axis=0)
    emb_bias = jnp.tile(emb, (B, 1))                      # (B*SEQ_PAD, HIDDEN)

    # Pack all LN gains / bias vectors into one (24, 256) slab (fewer inputs).
    rows = []
    for l in range(LAYERS):
        rows += [_vec_row(params["ln1_g"][l]), _vec_row(params["ln1_b"][l]),
                 _vec_row(params["qkv_b"][l]), _vec_row(params["o_b"][l]),
                 _vec_row(params["ln2_g"][l]), _vec_row(params["ln2_b"][l]),
                 _vec_row(params["fc1_b"][l]), _vec_row(params["fc2_b"][l])]
    rows += [_vec_row(params["lnf_g"]), _vec_row(params["lnf_b"]),
             _vec_row(params["cls_b"]), _vec_row(params["nut1_b"]),
             _vec_row(params["nut2_b"])]
    while len(rows) % 8:
        rows.append(jnp.zeros((VEC_W,), jnp.float32))
    vec = jnp.stack(rows)

    # Zero-pad the head weights so all output writes are lane-dense.
    cls_w_pad = jnp.pad(params["cls_w"], ((0, 0), (0, LOGITS_PAD - NUM_LABELS)))
    nut1_w_pad = jnp.pad(params["nut1_w"], ((0, NUT_IN_PAD - NUM_LABELS), (0, 0)))
    nut2_w_pad = jnp.pad(params["nut2_w"], ((0, 0), (0, OUT_PAD - NUTRITION_OUT)))

    args = (
        tokens, emb_bias, _build_attn_mask(B),
        params["patch_w"].astype(bf), params["qkv_w"].astype(bf),
        params["o_w"].astype(bf), params["fc1_w"].astype(bf),
        params["fc2_w"].astype(bf),
        vec, cls_w_pad, nut1_w_pad, nut2_w_pad,
    )

    vmem = pl.BlockSpec(memory_space=pltpu.MemorySpace.VMEM)
    logits_full, nut_full = pl.pallas_call(
        _fwd_kernel,
        out_shape=(
            jax.ShapeDtypeStruct((B, LOGITS_PAD), jnp.float32),
            jax.ShapeDtypeStruct((B, OUT_PAD), jnp.float32),
        ),
        in_specs=[vmem] * len(args),
        out_specs=(vmem, vmem),
    )(*args)

    return {"logits": logits_full[:, :NUM_LABELS],
            "nutrition_pred": nut_full[:, :NUTRITION_OUT]}


if __name__ == "__main__":
    key = jax.random.PRNGKey(0)
    pkey, xkey = jax.random.split(key)
    params = init_params(pkey)
    pixel_values = jax.random.normal(xkey, (2, CHANNELS, IMG, IMG), jnp.float32)

    out = jax.jit(forward)(params, pixel_values)
    jax.block_until_ready(out)

    assert out["logits"].shape == (2, NUM_LABELS)
    assert out["nutrition_pred"].shape == (2, NUTRITION_OUT)
    assert out["logits"].dtype == jnp.float32
    assert bool(jnp.all(jnp.isfinite(out["logits"])))
    assert bool(jnp.all(jnp.isfinite(out["nutrition_pred"])))
    print("KERNEL_OK")
</pallas_src>

<mosaic_0001>
module attributes {stable_mosaic.version = 11 : i64} {
  func.func @_fwd_kernel(%arg0: memref<16x768xbf16, #tpu.memory_space<vmem>>, %arg1: memref<16x32xf32, #tpu.memory_space<vmem>>, %arg2: memref<32x32xf32, #tpu.memory_space<vmem>>, %arg3: memref<768x32xbf16, #tpu.memory_space<vmem>>, %arg4: memref<2x32x96xbf16, #tpu.memory_space<vmem>>, %arg5: memref<2x32x32xbf16, #tpu.memory_space<vmem>>, %arg6: memref<2x32x64xbf16, #tpu.memory_space<vmem>>, %arg7: memref<2x64x32xbf16, #tpu.memory_space<vmem>>, %arg8: memref<24x256xf32, #tpu.memory_space<vmem>>, %arg9: memref<32x128xf32, #tpu.memory_space<vmem>>, %arg10: memref<16x256xf32, #tpu.memory_space<vmem>>, %arg11: memref<256x128xf32, #tpu.memory_space<vmem>>, %arg12: memref<2x128xf32, #tpu.memory_space<vmem>>, %arg13: memref<2x128xf32, #tpu.memory_space<vmem>>) attributes {dimension_semantics = [], scalar_prefetch = 0 : i64, scratch_operands = 0 : i64, tpu.core_type = #tpu.core_type<tc>} {
    %c0 = arith.constant 0 : index
    %c0_0 = arith.constant 0 : index
    %0 = vector.load %arg2[%c0, %c0_0] : memref<32x32xf32, #tpu.memory_space<vmem>>, vector<32x32xf32>
    %c0_1 = arith.constant 0 : index
    %c0_2 = arith.constant 0 : index
    %1 = vector.load %arg0[%c0_1, %c0_2] : memref<16x768xbf16, #tpu.memory_space<vmem>>, vector<16x768xbf16>
    %c0_3 = arith.constant 0 : index
    %c0_4 = arith.constant 0 : index
    %2 = vector.load %arg3[%c0_3, %c0_4] : memref<768x32xbf16, #tpu.memory_space<vmem>>, vector<768x32xbf16>
    %cst = arith.constant dense<0.000000e+00> : vector<16x32xf32>
    %3 = tpu.matmul %1, %2, %cst {dimension_numbers = #tpu.dot_dimension_numbers<[1], [0], [0], [1], [0, 0, 1, 1], [], []>} : vector<16x768xbf16>, vector<768x32xbf16>, vector<16x32xf32> -> vector<16x32xf32>
    %c0_5 = arith.constant 0 : index
    %c0_6 = arith.constant 0 : index
    %4 = vector.load %arg1[%c0_5, %c0_6] : memref<16x32xf32, #tpu.memory_space<vmem>>, vector<16x32xf32>
    %5 = arith.addf %3, %4 : vector<16x32xf32>
    %c0_7 = arith.constant 0 : index
    %c0_8 = arith.constant 0 : index
    %6 = vector.load %arg8[%c0_7, %c0_8] : memref<24x256xf32, #tpu.memory_space<vmem>>, vector<1x32xf32>
    %c1 = arith.constant 1 : index
    %c0_9 = arith.constant 0 : index
    %7 = vector.load %arg8[%c1, %c0_9] : memref<24x256xf32, #tpu.memory_space<vmem>>, vector<1x32xf32>
    %cst_10 = arith.constant dense<0.000000e+00> : vector<16xf32>
    %8 = vector.multi_reduction <add>, %5, %cst_10 [1] : vector<16x32xf32> to vector<16xf32>
    %9 = vector.shape_cast %8 : vector<16xf32> to vector<16x1xf32>
    %cst_11 = arith.constant 3.200000e+01 : f32
    %10 = vector.broadcast %cst_11 : f32 to vector<16x1xf32>
    %11 = arith.divf %9, %10 : vector<16x1xf32>
    %12 = vector.broadcast %11 : vector<16x1xf32> to vector<16x32xf32>
    %13 = arith.subf %5, %12 : vector<16x32xf32>
    %14 = arith.mulf %13, %13 : vector<16x32xf32>
    %cst_12 = arith.constant dense<0.000000e+00> : vector<16xf32>
    %15 = vector.multi_reduction <add>, %14, %cst_12 [1] : vector<16x32xf32> to vector<16xf32>
    %16 = vector.shape_cast %15 : vector<16xf32> to vector<16x1xf32>
    %cst_13 = arith.constant 3.200000e+01 : f32
    %17 = vector.broadcast %cst_13 : f32 to vector<16x1xf32>
    %18 = arith.divf %16, %17 : vector<16x1xf32>
    %19 = vector.broadcast %11 : vector<16x1xf32> to vector<16x32xf32>
    %20 = arith.subf %5, %19 : vector<16x32xf32>
    %cst_14 = arith.constant 9.99999996E-13 : f32
    %21 = vector.broadcast %cst_14 : f32 to vector<16x1xf32>
    %22 = arith.addf %18, %21 : vector<16x1xf32>
    %23 = math.rsqrt %22 : vector<16x1xf32>
    %24 = vector.broadcast %23 : vector<16x1xf32> to vector<16x32xf32>
    %25 = arith.mulf %20, %24 : vector<16x32xf32>
    %26 = vector.broadcast %6 : vector<1x32xf32> to vector<16x32xf32>
    %27 = arith.mulf %25, %26 : vector<16x32xf32>
    %28 = vector.broadcast %7 : vector<1x32xf32> to vector<16x32xf32>
    %29 = arith.addf %27, %28 : vector<16x32xf32>
    %30 = arith.truncf %29 : vector<16x32xf32> to vector<16x32xbf16>
    %c0_15 = arith.constant 0 : index
    %c0_16 = arith.constant 0 : index
    %c0_17 = arith.constant 0 : index
    %31 = vector.load %arg4[%c0_15, %c0_16, %c0_17] : memref<2x32x96xbf16, #tpu.memory_space<vmem>>, vector<1x32x96xbf16>
    %32 = vector.shape_cast %31 : vector<1x32x96xbf16> to vector<32x96xbf16>
    %cst_18 = arith.constant dense<0.000000e+00> : vector<16x96xf32>
    %33 = tpu.matmul %30, %32, %cst_18 {dimension_numbers = #tpu.dot_dimension_numbers<[1], [0], [0], [1], [0, 0, 1, 1], [], []>} : vector<16x32xbf16>, vector<32x96xbf16>, vector<16x96xf32> -> vector<16x96xf32>
    %c2 = arith.constant 2 : index
    %c0_19 = arith.constant 0 : index
    %34 = vector.load %arg8[%c2, %c0_19] : memref<24x256xf32, #tpu.memory_space<vmem>>, vector<1x96xf32>
    %35 = vector.broadcast %34 : vector<1x96xf32> to vector<16x96xf32>
    %36 = arith.addf %33, %35 : vector<16x96xf32>
    %37 = vector.extract_strided_slice %36 {offsets = [0, 0], sizes = [16, 16], strides = [1, 1]} : vector<16x96xf32> to vector<16x16xf32>
    %38 = vector.extract_strided_slice %36 {offsets = [0, 16], sizes = [16, 16], strides = [1, 1]} : vector<16x96xf32> to vector<16x16xf32>
    %39 = tpu.concatenate %37, %38 in 0 : vector<16x16xf32>, vector<16x16xf32> -> vector<32x16xf32>
    %40 = vector.extract_strided_slice %36 {offsets = [0, 32], sizes = [16, 16], strides = [1, 1]} : vector<16x96xf32> to vector<16x16xf32>
    %41 = vector.extract_strided_slice %36 {offsets = [0, 48], sizes = [16, 16], strides = [1, 1]} : vector<16x96xf32> to vector<16x16xf32>
    %42 = tpu.concatenate %40, %41 in 0 : vector<16x16xf32>, vector<16x16xf32> -> vector<32x16xf32>
    %43 = vector.extract_strided_slice %36 {offsets = [0, 64], sizes = [16, 16], strides = [1, 1]} : vector<16x96xf32> to vector<16x16xf32>
    %44 = vector.extract_strided_slice %36 {offsets = [0, 80], sizes = [16, 16], strides = [1, 1]} : vector<16x96xf32> to vector<16x16xf32>
    %45 = tpu.concatenate %43, %44 in 0 : vector<16x16xf32>, vector<16x16xf32> -> vector<32x16xf32>
    %46 = arith.truncf %39 : vector<32x16xf32> to vector<32x16xbf16>
    %47 = arith.truncf %42 : vector<32x16xf32> to vector<32x16xbf16>
    %cst_20 = arith.constant dense<0.000000e+00> : vector<32x32xf32>
    %48 = tpu.matmul %46, %47, %cst_20 {dimension_numbers = #tpu.dot_dimension_numbers<[1], [1], [0], [0], [0, 0, 1, 0], [], []>} : vector<32x16xbf16>, vector<32x16xbf16>, vector<32x32xf32> -> vector<32x32xf32>
    %cst_21 = arith.constant 2.500000e-01 : f32
    %49 = vector.broadcast %cst_21 : f32 to vector<32x32xf32>
    %50 = arith.mulf %48, %49 : vector<32x32xf32>
    %51 = arith.addf %50, %0 : vector<32x32xf32>
    %cst_22 = arith.constant dense<0xFF800000> : vector<32xf32>
    %52 = vector.multi_reduction <maximumf>, %51, %cst_22 [1] : vector<32x32xf32> to vector<32xf32>
    %53 = vector.shape_cast %52 : vector<32xf32> to vector<32x1xf32>
    %54 = vector.broadcast %53 : vector<32x1xf32> to vector<32x32xf32>
    %55 = arith.subf %51, %54 : vector<32x32xf32>
    %56 = math.exp %55 : vector<32x32xf32>
    %cst_23 = arith.constant dense<0.000000e+00> : vector<32xf32>
    %57 = vector.multi_reduction <add>, %56, %cst_23 [1] : vector<32x32xf32> to vector<32xf32>
    %58 = vector.shape_cast %57 : vector<32xf32> to vector<32x1xf32>
    %59 = tpu.reciprocal %58 {approx = true} : vector<32x1xf32> -> vector<32x1xf32>
    %60 = vector.broadcast %59 : vector<32x1xf32> to vector<32x32xf32>
    %61 = arith.mulf %56, %60 : vector<32x32xf32>
    %62 = arith.truncf %61 : vector<32x32xf32> to vector<32x32xbf16>
    %63 = arith.truncf %45 : vector<32x16xf32> to vector<32x16xbf16>
    %cst_24 = arith.constant dense<0.000000e+00> : vector<32x16xf32>
    %64 = tpu.matmul %62, %63, %cst_24 {dimension_numbers = #tpu.dot_dimension_numbers<[1], [0], [0], [1], [0, 0, 1, 1], [], []>} : vector<32x32xbf16>, vector<32x16xbf16>, vector<32x16xf32> -> vector<32x16xf32>
    %c0_25 = arith.constant 0 : index
    %c0_26 = arith.constant 0 : index
    %c0_27 = arith.constant 0 : index
    %65 = vector.load %arg5[%c0_25, %c0_26, %c0_27] : memref<2x32x32xbf16, #tpu.memory_space<vmem>>, vector<1x32x32xbf16>
    %66 = vector.shape_cast %65 : vector<1x32x32xbf16> to vector<32x32xbf16>
    %67 = vector.extract_strided_slice %64 {offsets = [0, 0], sizes = [16, 16], strides = [1, 1]} : vector<32x16xf32> to vector<16x16xf32>
    %68 = arith.truncf %67 : vector<16x16xf32> to vector<16x16xbf16>
    %69 = vector.extract_strided_slice %66 {offsets = [0, 0], sizes = [16, 32], strides = [1, 1]} : vector<32x32xbf16> to vector<16x32xbf16>
    %cst_28 = arith.constant dense<0.000000e+00> : vector<16x32xf32>
    %70 = tpu.matmul %68, %69, %cst_28 {dimension_numbers = #tpu.dot_dimension_numbers<[1], [0], [0], [1], [0, 0, 1, 1], [], []>} : vector<16x16xbf16>, vector<16x32xbf16>, vector<16x32xf32> -> vector<16x32xf32>
    %71 = vector.extract_strided_slice %64 {offsets = [16, 0], sizes = [16, 16], strides = [1, 1]} : vector<32x16xf32> to vector<16x16xf32>
    %72 = arith.truncf %71 : vector<16x16xf32> to vector<16x16xbf16>
    %73 = vector.extract_strided_slice %66 {offsets = [16, 0], sizes = [16, 32], strides = [1, 1]} : vector<32x32xbf16> to vector<16x32xbf16>
    %cst_29 = arith.constant dense<0.000000e+00> : vector<16x32xf32>
    %74 = tpu.matmul %72, %73, %cst_29 {dimension_numbers = #tpu.dot_dimension_numbers<[1], [0], [0], [1], [0, 0, 1, 1], [], []>} : vector<16x16xbf16>, vector<16x32xbf16>, vector<16x32xf32> -> vector<16x32xf32>
    %75 = arith.addf %70, %74 : vector<16x32xf32>
    %76 = arith.addf %5, %75 : vector<16x32xf32>
    %c3 = arith.constant 3 : index
    %c0_30 = arith.constant 0 : index
    %77 = vector.load %arg8[%c3, %c0_30] : memref<24x256xf32, #tpu.memory_space<vmem>>, vector<1x32xf32>
    %78 = vector.broadcast %77 : vector<1x32xf32> to vector<16x32xf32>
    %79 = arith.addf %76, %78 : vector<16x32xf32>
    %c4 = arith.constant 4 : index
    %c0_31 = arith.constant 0 : index
    %80 = vector.load %arg8[%c4, %c0_31] : memref<24x256xf32, #tpu.memory_space<vmem>>, vector<1x32xf32>
    %c5 = arith.constant 5 : index
    %c0_32 = arith.constant 0 : index
    %81 = vector.load %arg8[%c5, %c0_32] : memref<24x256xf32, #tpu.memory_space<vmem>>, vector<1x32xf32>
    %cst_33 = arith.constant dense<0.000000e+00> : vector<16xf32>
    %82 = vector.multi_reduction <add>, %79, %cst_33 [1] : vector<16x32xf32> to vector<16xf32>
    %83 = vector.shape_cast %82 : vector<16xf32> to vector<16x1xf32>
    %cst_34 = arith.constant 3.200000e+01 : f32
    %84 = vector.broadcast %cst_34 : f32 to vector<16x1xf32>
    %85 = arith.divf %83, %84 : vector<16x1xf32>
    %86 = vector.broadcast %85 : vector<16x1xf32> to vector<16x32xf32>
    %87 = arith.subf %79, %86 : vector<16x32xf32>
    %88 = arith.mulf %87, %87 : vector<16x32xf32>
    %cst_35 = arith.constant dense<0.000000e+00> : vector<16xf32>
    %89 = vector.multi_reduction <add>, %88, %cst_35 [1] : vector<16x32xf32> to vector<16xf32>
    %90 = vector.shape_cast %89 : vector<16xf32> to vector<16x1xf32>
    %cst_36 = arith.constant 3.200000e+01 : f32
    %91 = vector.broadcast %cst_36 : f32 to vector<16x1xf32>
    %92 = arith.divf %90, %91 : vector<16x1xf32>
    %93 = vector.broadcast %85 : vector<16x1xf32> to vector<16x32xf32>
    %94 = arith.subf %79, %93 : vector<16x32xf32>
    %cst_37 = arith.constant 9.99999996E-13 : f32
    %95 = vector.broadcast %cst_37 : f32 to vector<16x1xf32>
    %96 = arith.addf %92, %95 : vector<16x1xf32>
    %97 = math.rsqrt %96 : vector<16x1xf32>
    %98 = vector.broadcast %97 : vector<16x1xf32> to vector<16x32xf32>
    %99 = arith.mulf %94, %98 : vector<16x32xf32>
    %100 = vector.broadcast %80 : vector<1x32xf32> to vector<16x32xf32>
    %101 = arith.mulf %99, %100 : vector<16x32xf32>
    %102 = vector.broadcast %81 : vector<1x32xf32> to vector<16x32xf32>
    %103 = arith.addf %101, %102 : vector<16x32xf32>
    %104 = arith.truncf %103 : vector<16x32xf32> to vector<16x32xbf16>
    %c0_38 = arith.constant 0 : index
    %c0_39 = arith.constant 0 : index
    %c0_40 = arith.constant 0 : index
    %105 = vector.load %arg6[%c0_38, %c0_39, %c0_40] : memref<2x32x64xbf16, #tpu.memory_space<vmem>>, vector<1x32x64xbf16>
    %106 = vector.shape_cast %105 : vector<1x32x64xbf16> to vector<32x64xbf16>
    %cst_41 = arith.constant dense<0.000000e+00> : vector<16x64xf32>
    %107 = tpu.matmul %104, %106, %cst_41 {dimension_numbers = #tpu.dot_dimension_numbers<[1], [0], [0], [1], [0, 0, 1, 1], [], []>} : vector<16x32xbf16>, vector<32x64xbf16>, vector<16x64xf32> -> vector<16x64xf32>
    %c6 = arith.constant 6 : index
    %c0_42 = arith.constant 0 : index
    %108 = vector.load %arg8[%c6, %c0_42] : memref<24x256xf32, #tpu.memory_space<vmem>>, vector<1x64xf32>
    %109 = vector.broadcast %108 : vector<1x64xf32> to vector<16x64xf32>
    %110 = arith.addf %107, %109 : vector<16x64xf32>
    %cst_43 = arith.constant 0.707106769 : f32
    %111 = vector.broadcast %cst_43 : f32 to vector<16x64xf32>
    %112 = arith.mulf %110, %111 : vector<16x64xf32>
    %113 = math.absf %112 : vector<16x64xf32>
    %cst_44 = arith.constant 0.327591091 : f32
    %114 = vector.broadcast %cst_44 : f32 to vector<16x64xf32>
    %115 = arith.mulf %114, %113 : vector<16x64xf32>
    %cst_45 = arith.constant 1.000000e+00 : f32
    %116 = vector.broadcast %cst_45 : f32 to vector<16x64xf32>
    %117 = arith.addf %116, %115 : vector<16x64xf32>
    %cst_46 = arith.constant 1.000000e+00 : f32
    %118 = vector.broadcast %cst_46 : f32 to vector<16x64xf32>
    %119 = arith.divf %118, %117 : vector<16x64xf32>
    %cst_47 = arith.constant 1.06140542 : f32
    %120 = vector.broadcast %cst_47 : f32 to vector<16x64xf32>
    %121 = arith.mulf %120, %119 : vector<16x64xf32>
    %cst_48 = arith.constant 1.45315206 : f32
    %122 = vector.broadcast %cst_48 : f32 to vector<16x64xf32>
    %123 = arith.subf %121, %122 : vector<16x64xf32>
    %124 = arith.mulf %123, %119 : vector<16x64xf32>
    %cst_49 = arith.constant 1.42141378 : f32
    %125 = vector.broadcast %cst_49 : f32 to vector<16x64xf32>
    %126 = arith.addf %124, %125 : vector<16x64xf32>
    %127 = arith.mulf %126, %119 : vector<16x64xf32>
    %cst_50 = arith.constant 0.284496725 : f32
    %128 = vector.broadcast %cst_50 : f32 to vector<16x64xf32>
    %129 = arith.subf %127, %128 : vector<16x64xf32>
    %130 = arith.mulf %129, %119 : vector<16x64xf32>
    %cst_51 = arith.constant 0.254829586 : f32
    %131 = vector.broadcast %cst_51 : f32 to vector<16x64xf32>
    %132 = arith.addf %130, %131 : vector<16x64xf32>
    %133 = arith.mulf %132, %119 : vector<16x64xf32>
    %cst_52 = arith.constant 0.000000e+00 : f32
    %134 = vector.broadcast %cst_52 : f32 to vector<16x64xf32>
    %135 = arith.subf %134, %113 : vector<16x64xf32>
    %136 = arith.mulf %135, %113 : vector<16x64xf32>
    %137 = math.exp %136 : vector<16x64xf32>
    %138 = arith.mulf %133, %137 : vector<16x64xf32>
    %cst_53 = arith.constant 1.000000e+00 : f32
    %139 = vector.broadcast %cst_53 : f32 to vector<16x64xf32>
    %140 = arith.subf %139, %138 : vector<16x64xf32>
    %cst_54 = arith.constant 0.000000e+00 : f32
    %141 = vector.broadcast %cst_54 : f32 to vector<16x64xf32>
    %142 = arith.cmpf olt, %112, %141 : vector<16x64xf32>
    %cst_55 = arith.constant 0.000000e+00 : f32
    %143 = vector.broadcast %cst_55 : f32 to vector<16x64xf32>
    %144 = arith.subf %143, %140 : vector<16x64xf32>
    %145 = arith.select %142, %144, %140 : vector<16x64xi1>, vector<16x64xf32>
    %cst_56 = arith.constant 5.000000e-01 : f32
    %146 = vector.broadcast %cst_56 : f32 to vector<16x64xf32>
    %147 = arith.mulf %146, %110 : vector<16x64xf32>
    %cst_57 = arith.constant 1.000000e+00 : f32
    %148 = vector.broadcast %cst_57 : f32 to vector<16x64xf32>
    %149 = arith.addf %148, %145 : vector<16x64xf32>
    %150 = arith.mulf %147, %149 : vector<16x64xf32>
    %151 = arith.truncf %150 : vector<16x64xf32> to vector<16x64xbf16>
    %c0_58 = arith.constant 0 : index
    %c0_59 = arith.constant 0 : index
    %c0_60 = arith.constant 0 : index
    %152 = vector.load %arg7[%c0_58, %c0_59, %c0_60] : memref<2x64x32xbf16, #tpu.memory_space<vmem>>, vector<1x64x32xbf16>
    %153 = vector.shape_cast %152 : vector<1x64x32xbf16> to vector<64x32xbf16>
    %cst_61 = arith.constant dense<0.000000e+00> : vector<16x32xf32>
    %154 = tpu.matmul %151, %153, %cst_61 {dimension_numbers = #tpu.dot_dimension_numbers<[1], [0], [0], [1], [0, 0, 1, 1], [], []>} : vector<16x64xbf16>, vector<64x32xbf16>, vector<16x32xf32> -> vector<16x32xf32>
    %c7 = arith.constant 7 : index
    %c0_62 = arith.constant 0 : index
    %155 = vector.load %arg8[%c7, %c0_62] : memref<24x256xf32, #tpu.memory_space<vmem>>, vector<1x32xf32>
    %156 = vector.broadcast %155 : vector<1x32xf32> to vector<16x32xf32>
    %157 = arith.addf %154, %156 : vector<16x32xf32>
    %158 = arith.addf %79, %157 : vector<16x32xf32>
    %c8 = arith.constant 8 : index
    %c0_63 = arith.constant 0 : index
    %159 = vector.load %arg8[%c8, %c0_63] : memref<24x256xf32, #tpu.memory_space<vmem>>, vector<1x32xf32>
    %c9 = arith.constant 9 : index
    %c0_64 = arith.constant 0 : index
    %160 = vector.load %arg8[%c9, %c0_64] : memref<24x256xf32, #tpu.memory_space<vmem>>, vector<1x32xf32>
    %cst_65 = arith.constant dense<0.000000e+00> : vector<16xf32>
    %161 = vector.multi_reduction <add>, %158, %cst_65 [1] : vector<16x32xf32> to vector<16xf32>
    %162 = vector.shape_cast %161 : vector<16xf32> to vector<16x1xf32>
    %cst_66 = arith.constant 3.200000e+01 : f32
    %163 = vector.broadcast %cst_66 : f32 to vector<16x1xf32>
    %164 = arith.divf %162, %163 : vector<16x1xf32>
    %165 = vector.broadcast %164 : vector<16x1xf32> to vector<16x32xf32>
    %166 = arith.subf %158, %165 : vector<16x32xf32>
    %167 = arith.mulf %166, %166 : vector<16x32xf32>
    %cst_67 = arith.constant dense<0.000000e+00> : vector<16xf32>
    %168 = vector.multi_reduction <add>, %167, %cst_67 [1] : vector<16x32xf32> to vector<16xf32>
    %169 = vector.shape_cast %168 : vector<16xf32> to vector<16x1xf32>
    %cst_68 = arith.constant 3.200000e+01 : f32
    %170 = vector.broadcast %cst_68 : f32 to vector<16x1xf32>
    %171 = arith.divf %169, %170 : vector<16x1xf32>
    %172 = vector.broadcast %164 : vector<16x1xf32> to vector<16x32xf32>
    %173 = arith.subf %158, %172 : vector<16x32xf32>
    %cst_69 = arith.constant 9.99999996E-13 : f32
    %174 = vector.broadcast %cst_69 : f32 to vector<16x1xf32>
    %175 = arith.addf %171, %174 : vector<16x1xf32>
    %176 = math.rsqrt %175 : vector<16x1xf32>
    %177 = vector.broadcast %176 : vector<16x1xf32> to vector<16x32xf32>
    %178 = arith.mulf %173, %177 : vector<16x32xf32>
    %179 = vector.broadcast %159 : vector<1x32xf32> to vector<16x32xf32>
    %180 = arith.mulf %178, %179 : vector<16x32xf32>
    %181 = vector.broadcast %160 : vector<1x32xf32> to vector<16x32xf32>
    %182 = arith.addf %180, %181 : vector<16x32xf32>
    %183 = arith.truncf %182 : vector<16x32xf32> to vector<16x32xbf16>
    %c1_70 = arith.constant 1 : index
    %c0_71 = arith.constant 0 : index
    %c0_72 = arith.constant 0 : index
    %184 = vector.load %arg4[%c1_70, %c0_71, %c0_72] : memref<2x32x96xbf16, #tpu.memory_space<vmem>>, vector<1x32x96xbf16>
    %185 = vector.shape_cast %184 : vector<1x32x96xbf16> to vector<32x96xbf16>
    %cst_73 = arith.constant dense<0.000000e+00> : vector<16x96xf32>
    %186 = tpu.matmul %183, %185, %cst_73 {dimension_numbers = #tpu.dot_dimension_numbers<[1], [0], [0], [1], [0, 0, 1, 1], [], []>} : vector<16x32xbf16>, vector<32x96xbf16>, vector<16x96xf32> -> vector<16x96xf32>
    %c10 = arith.constant 10 : index
    %c0_74 = arith.constant 0 : index
    %187 = vector.load %arg8[%c10, %c0_74] : memref<24x256xf32, #tpu.memory_space<vmem>>, vector<1x96xf32>
    %188 = vector.broadcast %187 : vector<1x96xf32> to vector<16x96xf32>
    %189 = arith.addf %186, %188 : vector<16x96xf32>
    %190 = vector.extract_strided_slice %189 {offsets = [0, 0], sizes = [16, 16], strides = [1, 1]} : vector<16x96xf32> to vector<16x16xf32>
    %191 = vector.extract_strided_slice %189 {offsets = [0, 16], sizes = [16, 16], strides = [1, 1]} : vector<16x96xf32> to vector<16x16xf32>
    %192 = tpu.concatenate %190, %191 in 0 : vector<16x16xf32>, vector<16x16xf32> -> vector<32x16xf32>
    %193 = vector.extract_strided_slice %189 {offsets = [0, 32], sizes = [16, 16], strides = [1, 1]} : vector<16x96xf32> to vector<16x16xf32>
    %194 = vector.extract_strided_slice %189 {offsets = [0, 48], sizes = [16, 16], strides = [1, 1]} : vector<16x96xf32> to vector<16x16xf32>
    %195 = tpu.concatenate %193, %194 in 0 : vector<16x16xf32>, vector<16x16xf32> -> vector<32x16xf32>
    %196 = vector.extract_strided_slice %189 {offsets = [0, 64], sizes = [16, 16], strides = [1, 1]} : vector<16x96xf32> to vector<16x16xf32>
    %197 = vector.extract_strided_slice %189 {offsets = [0, 80], sizes = [16, 16], strides = [1, 1]} : vector<16x96xf32> to vector<16x16xf32>
    %198 = tpu.concatenate %196, %197 in 0 : vector<16x16xf32>, vector<16x16xf32> -> vector<32x16xf32>
    %199 = arith.truncf %192 : vector<32x16xf32> to vector<32x16xbf16>
    %200 = arith.truncf %195 : vector<32x16xf32> to vector<32x16xbf16>
    %cst_75 = arith.constant dense<0.000000e+00> : vector<32x32xf32>
    %201 = tpu.matmul %199, %200, %cst_75 {dimension_numbers = #tpu.dot_dimension_numbers<[1], [1], [0], [0], [0, 0, 1, 0], [], []>} : vector<32x16xbf16>, vector<32x16xbf16>, vector<32x32xf32> -> vector<32x32xf32>
    %cst_76 = arith.constant 2.500000e-01 : f32
    %202 = vector.broadcast %cst_76 : f32 to vector<32x32xf32>
    %203 = arith.mulf %201, %202 : vector<32x32xf32>
    %204 = arith.addf %203, %0 : vector<32x32xf32>
    %cst_77 = arith.constant dense<0xFF800000> : vector<32xf32>
    %205 = vector.multi_reduction <maximumf>, %204, %cst_77 [1] : vector<32x32xf32> to vector<32xf32>
    %206 = vector.shape_cast %205 : vector<32xf32> to vector<32x1xf32>
    %207 = vector.broadcast %206 : vector<32x1xf32> to vector<32x32xf32>
    %208 = arith.subf %204, %207 : vector<32x32xf32>
    %209 = math.exp %208 : vector<32x32xf32>
    %cst_78 = arith.constant dense<0.000000e+00> : vector<32xf32>
    %210 = vector.multi_reduction <add>, %209, %cst_78 [1] : vector<32x32xf32> to vector<32xf32>
    %211 = vector.shape_cast %210 : vector<32xf32> to vector<32x1xf32>
    %212 = tpu.reciprocal %211 {approx = true} : vector<32x1xf32> -> vector<32x1xf32>
    %213 = vector.broadcast %212 : vector<32x1xf32> to vector<32x32xf32>
    %214 = arith.mulf %209, %213 : vector<32x32xf32>
    %215 = arith.truncf %214 : vector<32x32xf32> to vector<32x32xbf16>
    %216 = arith.truncf %198 : vector<32x16xf32> to vector<32x16xbf16>
    %cst_79 = arith.constant dense<0.000000e+00> : vector<32x16xf32>
    %217 = tpu.matmul %215, %216, %cst_79 {dimension_numbers = #tpu.dot_dimension_numbers<[1], [0], [0], [1], [0, 0, 1, 1], [], []>} : vector<32x32xbf16>, vector<32x16xbf16>, vector<32x16xf32> -> vector<32x16xf32>
    %c1_80 = arith.constant 1 : index
    %c0_81 = arith.constant 0 : index
    %c0_82 = arith.constant 0 : index
    %218 = vector.load %arg5[%c1_80, %c0_81, %c0_82] : memref<2x32x32xbf16, #tpu.memory_space<vmem>>, vector<1x32x32xbf16>
    %219 = vector.shape_cast %218 : vector<1x32x32xbf16> to vector<32x32xbf16>
    %220 = vector.extract_strided_slice %217 {offsets = [0, 0], sizes = [16, 16], strides = [1, 1]} : vector<32x16xf32> to vector<16x16xf32>
    %221 = arith.truncf %220 : vector<16x16xf32> to vector<16x16xbf16>
    %222 = vector.extract_strided_slice %219 {offsets = [0, 0], sizes = [16, 32], strides = [1, 1]} : vector<32x32xbf16> to vector<16x32xbf16>
    %cst_83 = arith.constant dense<0.000000e+00> : vector<16x32xf32>
    %223 = tpu.matmul %221, %222, %cst_83 {dimension_numbers = #tpu.dot_dimension_numbers<[1], [0], [0], [1], [0, 0, 1, 1], [], []>} : vector<16x16xbf16>, vector<16x32xbf16>, vector<16x32xf32> -> vector<16x32xf32>
    %224 = vector.extract_strided_slice %217 {offsets = [16, 0], sizes = [16, 16], strides = [1, 1]} : vector<32x16xf32> to vector<16x16xf32>
    %225 = arith.truncf %224 : vector<16x16xf32> to vector<16x16xbf16>
    %226 = vector.extract_strided_slice %219 {offsets = [16, 0], sizes = [16, 32], strides = [1, 1]} : vector<32x32xbf16> to vector<16x32xbf16>
    %cst_84 = arith.constant dense<0.000000e+00> : vector<16x32xf32>
    %227 = tpu.matmul %225, %226, %cst_84 {dimension_numbers = #tpu.dot_dimension_numbers<[1], [0], [0], [1], [0, 0, 1, 1], [], []>} : vector<16x16xbf16>, vector<16x32xbf16>, vector<16x32xf32> -> vector<16x32xf32>
    %228 = arith.addf %223, %227 : vector<16x32xf32>
    %229 = arith.addf %158, %228 : vector<16x32xf32>
    %c11 = arith.constant 11 : index
    %c0_85 = arith.constant 0 : index
    %230 = vector.load %arg8[%c11, %c0_85] : memref<24x256xf32, #tpu.memory_space<vmem>>, vector<1x32xf32>
    %231 = vector.broadcast %230 : vector<1x32xf32> to vector<16x32xf32>
    %232 = arith.addf %229, %231 : vector<16x32xf32>
    %c12 = arith.constant 12 : index
    %c0_86 = arith.constant 0 : index
    %233 = vector.load %arg8[%c12, %c0_86] : memref<24x256xf32, #tpu.memory_space<vmem>>, vector<1x32xf32>
    %c13 = arith.constant 13 : index
    %c0_87 = arith.constant 0 : index
    %234 = vector.load %arg8[%c13, %c0_87] : memref<24x256xf32, #tpu.memory_space<vmem>>, vector<1x32xf32>
    %cst_88 = arith.constant dense<0.000000e+00> : vector<16xf32>
    %235 = vector.multi_reduction <add>, %232, %cst_88 [1] : vector<16x32xf32> to vector<16xf32>
    %236 = vector.shape_cast %235 : vector<16xf32> to vector<16x1xf32>
    %cst_89 = arith.constant 3.200000e+01 : f32
    %237 = vector.broadcast %cst_89 : f32 to vector<16x1xf32>
    %238 = arith.divf %236, %237 : vector<16x1xf32>
    %239 = vector.broadcast %238 : vector<16x1xf32> to vector<16x32xf32>
    %240 = arith.subf %232, %239 : vector<16x32xf32>
    %241 = arith.mulf %240, %240 : vector<16x32xf32>
    %cst_90 = arith.constant dense<0.000000e+00> : vector<16xf32>
    %242 = vector.multi_reduction <add>, %241, %cst_90 [1] : vector<16x32xf32> to vector<16xf32>
    %243 = vector.shape_cast %242 : vector<16xf32> to vector<16x1xf32>
    %cst_91 = arith.constant 3.200000e+01 : f32
    %244 = vector.broadcast %cst_91 : f32 to vector<16x1xf32>
    %245 = arith.divf %243, %244 : vector<16x1xf32>
    %246 = vector.broadcast %238 : vector<16x1xf32> to vector<16x32xf32>
    %247 = arith.subf %232, %246 : vector<16x32xf32>
    %cst_92 = arith.constant 9.99999996E-13 : f32
    %248 = vector.broadcast %cst_92 : f32 to vector<16x1xf32>
    %249 = arith.addf %245, %248 : vector<16x1xf32>
    %250 = math.rsqrt %249 : vector<16x1xf32>
    %251 = vector.broadcast %250 : vector<16x1xf32> to vector<16x32xf32>
    %252 = arith.mulf %247, %251 : vector<16x32xf32>
    %253 = vector.broadcast %233 : vector<1x32xf32> to vector<16x32xf32>
    %254 = arith.mulf %252, %253 : vector<16x32xf32>
    %255 = vector.broadcast %234 : vector<1x32xf32> to vector<16x32xf32>
    %256 = arith.addf %254, %255 : vector<16x32xf32>
    %257 = arith.truncf %256 : vector<16x32xf32> to vector<16x32xbf16>
    %c1_93 = arith.constant 1 : index
    %c0_94 = arith.constant 0 : index
    %c0_95 = arith.constant 0 : index
    %258 = vector.load %arg6[%c1_93, %c0_94, %c0_95] : memref<2x32x64xbf16, #tpu.memory_space<vmem>>, vector<1x32x64xbf16>
    %259 = vector.shape_cast %258 : vector<1x32x64xbf16> to vector<32x64xbf16>
    %cst_96 = arith.constant dense<0.000000e+00> : vector<16x64xf32>
    %260 = tpu.matmul %257, %259, %cst_96 {dimension_numbers = #tpu.dot_dimension_numbers<[1], [0], [0], [1], [0, 0, 1, 1], [], []>} : vector<16x32xbf16>, vector<32x64xbf16>, vector<16x64xf32> -> vector<16x64xf32>
    %c14 = arith.constant 14 : index
    %c0_97 = arith.constant 0 : index
    %261 = vector.load %arg8[%c14, %c0_97] : memref<24x256xf32, #tpu.memory_space<vmem>>, vector<1x64xf32>
    %262 = vector.broadcast %261 : vector<1x64xf32> to vector<16x64xf32>
    %263 = arith.addf %260, %262 : vector<16x64xf32>
    %cst_98 = arith.constant 0.707106769 : f32
    %264 = vector.broadcast %cst_98 : f32 to vector<16x64xf32>
    %265 = arith.mulf %263, %264 : vector<16x64xf32>
    %266 = math.absf %265 : vector<16x64xf32>
    %cst_99 = arith.constant 0.327591091 : f32
    %267 = vector.broadcast %cst_99 : f32 to vector<16x64xf32>
    %268 = arith.mulf %267, %266 : vector<16x64xf32>
    %cst_100 = arith.constant 1.000000e+00 : f32
    %269 = vector.broadcast %cst_100 : f32 to vector<16x64xf32>
    %270 = arith.addf %269, %268 : vector<16x64xf32>
    %cst_101 = arith.constant 1.000000e+00 : f32
    %271 = vector.broadcast %cst_101 : f32 to vector<16x64xf32>
    %272 = arith.divf %271, %270 : vector<16x64xf32>
    %cst_102 = arith.constant 1.06140542 : f32
    %273 = vector.broadcast %cst_102 : f32 to vector<16x64xf32>
    %274 = arith.mulf %273, %272 : vector<16x64xf32>
    %cst_103 = arith.constant 1.45315206 : f32
    %275 = vector.broadcast %cst_103 : f32 to vector<16x64xf32>
    %276 = arith.subf %274, %275 : vector<16x64xf32>
    %277 = arith.mulf %276, %272 : vector<16x64xf32>
    %cst_104 = arith.constant 1.42141378 : f32
    %278 = vector.broadcast %cst_104 : f32 to vector<16x64xf32>
    %279 = arith.addf %277, %278 : vector<16x64xf32>
    %280 = arith.mulf %279, %272 : vector<16x64xf32>
    %cst_105 = arith.constant 0.284496725 : f32
    %281 = vector.broadcast %cst_105 : f32 to vector<16x64xf32>
    %282 = arith.subf %280, %281 : vector<16x64xf32>
    %283 = arith.mulf %282, %272 : vector<16x64xf32>
    %cst_106 = arith.constant 0.254829586 : f32
    %284 = vector.broadcast %cst_106 : f32 to vector<16x64xf32>
    %285 = arith.addf %283, %284 : vector<16x64xf32>
    %286 = arith.mulf %285, %272 : vector<16x64xf32>
    %cst_107 = arith.constant 0.000000e+00 : f32
    %287 = vector.broadcast %cst_107 : f32 to vector<16x64xf32>
    %288 = arith.subf %287, %266 : vector<16x64xf32>
    %289 = arith.mulf %288, %266 : vector<16x64xf32>
    %290 = math.exp %289 : vector<16x64xf32>
    %291 = arith.mulf %286, %290 : vector<16x64xf32>
    %cst_108 = arith.constant 1.000000e+00 : f32
    %292 = vector.broadcast %cst_108 : f32 to vector<16x64xf32>
    %293 = arith.subf %292, %291 : vector<16x64xf32>
    %cst_109 = arith.constant 0.000000e+00 : f32
    %294 = vector.broadcast %cst_109 : f32 to vector<16x64xf32>
    %295 = arith.cmpf olt, %265, %294 : vector<16x64xf32>
    %cst_110 = arith.constant 0.000000e+00 : f32
    %296 = vector.broadcast %cst_110 : f32 to vector<16x64xf32>
    %297 = arith.subf %296, %293 : vector<16x64xf32>
    %298 = arith.select %295, %297, %293 : vector<16x64xi1>, vector<16x64xf32>
    %cst_111 = arith.constant 5.000000e-01 : f32
    %299 = vector.broadcast %cst_111 : f32 to vector<16x64xf32>
    %300 = arith.mulf %299, %263 : vector<16x64xf32>
    %cst_112 = arith.constant 1.000000e+00 : f32
    %301 = vector.broadcast %cst_112 : f32 to vector<16x64xf32>
    %302 = arith.addf %301, %298 : vector<16x64xf32>
    %303 = arith.mulf %300, %302 : vector<16x64xf32>
    %304 = arith.truncf %303 : vector<16x64xf32> to vector<16x64xbf16>
    %c1_113 = arith.constant 1 : index
    %c0_114 = arith.constant 0 : index
    %c0_115 = arith.constant 0 : index
    %305 = vector.load %arg7[%c1_113, %c0_114, %c0_115] : memref<2x64x32xbf16, #tpu.memory_space<vmem>>, vector<1x64x32xbf16>
    %306 = vector.shape_cast %305 : vector<1x64x32xbf16> to vector<64x32xbf16>
    %cst_116 = arith.constant dense<0.000000e+00> : vector<16x32xf32>
    %307 = tpu.matmul %304, %306, %cst_116 {dimension_numbers = #tpu.dot_dimension_numbers<[1], [0], [0], [1], [0, 0, 1, 1], [], []>} : vector<16x64xbf16>, vector<64x32xbf16>, vector<16x32xf32> -> vector<16x32xf32>
    %c15 = arith.constant 15 : index
    %c0_117 = arith.constant 0 : index
    %308 = vector.load %arg8[%c15, %c0_117] : memref<24x256xf32, #tpu.memory_space<vmem>>, vector<1x32xf32>
    %309 = vector.broadcast %308 : vector<1x32xf32> to vector<16x32xf32>
    %310 = arith.addf %307, %309 : vector<16x32xf32>
    %311 = arith.addf %232, %310 : vector<16x32xf32>
    %312 = tpu.iota {dimensions = array<i32: 0>} : vector<2x16xi32>
    %313 = tpu.iota {dimensions = array<i32: 1>} : vector<2x16xi32>
    %c8_i32 = arith.constant 8 : i32
    %314 = vector.broadcast %c8_i32 : i32 to vector<2x16xi32>
    %315 = arith.muli %312, %314 : vector<2x16xi32>
    %316 = arith.cmpi eq, %313, %315 : vector<2x16xi32>
    %cst_118 = arith.constant 1.000000e+00 : f32
    %cst_119 = arith.constant 0.000000e+00 : f32
    %317 = vector.broadcast %cst_118 : f32 to vector<2x16xf32>
    %318 = vector.broadcast %cst_119 : f32 to vector<2x16xf32>
    %319 = arith.select %316, %317, %318 : vector<2x16xi1>, vector<2x16xf32>
    %cst_120 = arith.constant dense<0.000000e+00> : vector<2x32xf32>
    %320 = tpu.matmul %319, %311, %cst_120 {dimension_numbers = #tpu.dot_dimension_numbers<[1], [0], [0], [1], [0, 0, 1, 1], [], []>} : vector<2x16xf32>, vector<16x32xf32>, vector<2x32xf32> -> vector<2x32xf32>
    %c16 = arith.constant 16 : index
    %c0_121 = arith.constant 0 : index
    %321 = vector.load %arg8[%c16, %c0_121] : memref<24x256xf32, #tpu.memory_space<vmem>>, vector<1x32xf32>
    %c17 = arith.constant 17 : index
    %c0_122 = arith.constant 0 : index
    %322 = vector.load %arg8[%c17, %c0_122] : memref<24x256xf32, #tpu.memory_space<vmem>>, vector<1x32xf32>
    %cst_123 = arith.constant dense<0.000000e+00> : vector<2xf32>
    %323 = vector.multi_reduction <add>, %320, %cst_123 [1] : vector<2x32xf32> to vector<2xf32>
    %324 = vector.shape_cast %323 : vector<2xf32> to vector<2x1xf32>
    %cst_124 = arith.constant 3.200000e+01 : f32
    %325 = vector.broadcast %cst_124 : f32 to vector<2x1xf32>
    %326 = arith.divf %324, %325 : vector<2x1xf32>
    %327 = vector.broadcast %326 : vector<2x1xf32> to vector<2x32xf32>
    %328 = arith.subf %320, %327 : vector<2x32xf32>
    %329 = arith.mulf %328, %328 : vector<2x32xf32>
    %cst_125 = arith.constant dense<0.000000e+00> : vector<2xf32>
    %330 = vector.multi_reduction <add>, %329, %cst_125 [1] : vector<2x32xf32> to vector<2xf32>
    %331 = vector.shape_cast %330 : vector<2xf32> to vector<2x1xf32>
    %cst_126 = arith.constant 3.200000e+01 : f32
    %332 = vector.broadcast %cst_126 : f32 to vector<2x1xf32>
    %333 = arith.divf %331, %332 : vector<2x1xf32>
    %334 = vector.broadcast %326 : vector<2x1xf32> to vector<2x32xf32>
    %335 = arith.subf %320, %334 : vector<2x32xf32>
    %cst_127 = arith.constant 9.99999996E-13 : f32
    %336 = vector.broadcast %cst_127 : f32 to vector<2x1xf32>
    %337 = arith.addf %333, %336 : vector<2x1xf32>
    %338 = math.rsqrt %337 : vector<2x1xf32>
    %339 = vector.broadcast %338 : vector<2x1xf32> to vector<2x32xf32>
    %340 = arith.mulf %335, %339 : vector<2x32xf32>
    %341 = vector.broadcast %321 : vector<1x32xf32> to vector<2x32xf32>
    %342 = arith.mulf %340, %341 : vector<2x32xf32>
    %343 = vector.broadcast %322 : vector<1x32xf32> to vector<2x32xf32>
    %344 = arith.addf %342, %343 : vector<2x32xf32>
    %c0_128 = arith.constant 0 : index
    %c0_129 = arith.constant 0 : index
    %345 = vector.load %arg9[%c0_128, %c0_129] : memref<32x128xf32, #tpu.memory_space<vmem>>, vector<32x128xf32>
    %cst_130 = arith.constant dense<0.000000e+00> : vector<2x128xf32>
    %346 = tpu.matmul %344, %345, %cst_130 {dimension_numbers = #tpu.dot_dimension_numbers<[1], [0], [0], [1], [0, 0, 1, 1], [], []>} : vector<2x32xf32>, vector<32x128xf32>, vector<2x128xf32> -> vector<2x128xf32>
    %c18 = arith.constant 18 : index
    %c0_131 = arith.constant 0 : index
    %347 = vector.load %arg8[%c18, %c0_131] : memref<24x256xf32, #tpu.memory_space<vmem>>, vector<1x128xf32>
    %348 = vector.broadcast %347 : vector<1x128xf32> to vector<2x128xf32>
    %349 = arith.addf %346, %348 : vector<2x128xf32>
    %c0_132 = arith.constant 0 : index
    %c0_133 = arith.constant 0 : index
    %350 = vector.load %arg12[%c0_132, %c0_133] : memref<2x128xf32, #tpu.memory_space<vmem>>, vector<2x128xf32>
    tpu.vector_store %arg12[%c0_132, %c0_133], %349 {strides = array<i32>} : memref<2x128xf32, #tpu.memory_space<vmem>>, vector<2x128xf32>,
    %351 = vector.extract_strided_slice %349 {offsets = [0, 0], sizes = [2, 16], strides = [1, 1]} : vector<2x128xf32> to vector<2x16xf32>
    %c0_134 = arith.constant 0 : index
    %c0_135 = arith.constant 0 : index
    %352 = vector.load %arg10[%c0_134, %c0_135] : memref<16x256xf32, #tpu.memory_space<vmem>>, vector<16x256xf32>
    %cst_136 = arith.constant dense<0.000000e+00> : vector<2x256xf32>
    %353 = tpu.matmul %351, %352, %cst_136 {dimension_numbers = #tpu.dot_dimension_numbers<[1], [0], [0], [1], [0, 0, 1, 1], [], []>} : vector<2x16xf32>, vector<16x256xf32>, vector<2x256xf32> -> vector<2x256xf32>
    %c19 = arith.constant 19 : index
    %c0_137 = arith.constant 0 : index
    %354 = vector.load %arg8[%c19, %c0_137] : memref<24x256xf32, #tpu.memory_space<vmem>>, vector<1x256xf32>
    %355 = vector.broadcast %354 : vector<1x256xf32> to vector<2x256xf32>
    %356 = arith.addf %353, %355 : vector<2x256xf32>
    %cst_138 = arith.constant 0.000000e+00 : f32
    %357 = vector.broadcast %cst_138 : f32 to vector<2x256xf32>
    %358 = arith.maximumf %356, %357 : vector<2x256xf32>
    %c0_139 = arith.constant 0 : index
    %c0_140 = arith.constant 0 : index
    %359 = vector.load %arg11[%c0_139, %c0_140] : memref<256x128xf32, #tpu.memory_space<vmem>>, vector<256x128xf32>
    %cst_141 = arith.constant dense<0.000000e+00> : vector<2x128xf32>
    %360 = tpu.matmul %358, %359, %cst_141 {dimension_numbers = #tpu.dot_dimension_numbers<[1], [0], [0], [1], [0, 0, 1, 1], [], []>} : vector<2x256xf32>, vector<256x128xf32>, vector<2x128xf32> -> vector<2x128xf32>
    %c20 = arith.constant 20 : index
    %c0_142 = arith.constant 0 : index
    %361 = vector.load %arg8[%c20, %c0_142] : memref<24x256xf32, #tpu.memory_space<vmem>>, vector<1x128xf32>
    %362 = vector.broadcast %361 : vector<1x128xf32> to vector<2x128xf32>
    %363 = arith.addf %360, %362 : vector<2x128xf32>
    %c0_143 = arith.constant 0 : index
    %c0_144 = arith.constant 0 : index
    %364 = vector.load %arg13[%c0_143, %c0_144] : memref<2x128xf32, #tpu.memory_space<vmem>>, vector<2x128xf32>
    tpu.vector_store %arg13[%c0_143, %c0_144], %363 {strides = array<i32>} : memref<2x128xf32, #tpu.memory_space<vmem>>, vector<2x128xf32>,
    return
  }
}

</mosaic_0001>

<bundles_post_ra>
// kernel: forward.1
= control target key start
LH: loop header
LB: loop body
LE: loop exit
PB: predicated region body
PF: predicated region fallthrough
CT: control target
= control target key end

     0   :  { %19 = vsyncpa [#allocation3], 0  ;;  %s3065_s0 = inlined_call_operand.vmem [shape: bf16[16,768], index: 0, kind: input, shape index: {}]   ;;  %s3066_s1 = inlined_call_operand.vmem [shape: f32[16,32], index: 1, kind: input, shape index: {}]   ;;  %s3067_s2 = inlined_call_operand.vmem [shape: f32[32,32], index: 2, kind: input, shape index: {}]   ;;  %s3068_s3 = inlined_call_operand.vmem [shape: bf16[768,32], index: 3, kind: input, shape index: {}]   ;;  %s3069_s4 = inlined_call_operand.vmem [shape: bf16[2,32,96], index: 4, kind: input, shape index: {}]   ;;  %s3070_s5 = inlined_call_operand.vmem [shape: bf16[2,32,32], index: 5, kind: input, shape index: {}]   ;;  %s3071_s6 = inlined_call_operand.vmem [shape: bf16[2,32,64], index: 6, kind: input, shape index: {}]   ;;  %s3072_s7 = inlined_call_operand.vmem [shape: bf16[2,64,32], index: 7, kind: input, shape index: {}]   ;;  %s3073_s8 = inlined_call_operand.vmem [shape: f32[24,256], index: 8, kind: input, shape index: {}]   ;;  %s3074_s9 = inlined_call_operand.vmem [shape: f32[32,128], index: 9, kind: input, shape index: {}]   ;;  %s3075_s10 = inlined_call_operand.vmem [shape: f32[16,256], index: 10, kind: input, shape index: {}]   ;;  %s3076_s11 = inlined_call_operand.vmem [shape: f32[256,128], index: 11, kind: input, shape index: {}]   ;;  %s3077_s12 = inlined_call_operand.hbm [shape: f32[2,128], index: 12, kind: output, shape index: {0}]   ;;  %s3078_s13 = inlined_call_operand.hbm [shape: f32[2,128], index: 13, kind: output, shape index: {1}]  }
   0x1   :  { %v2162_v0 = vld [vmem:[%s3068_s3 + $0x38] sm:$0xff]  ;;  %v2161_v4 = vld [vmem:[%s3068_s3 + $0x30] sm:$0xff]  ;;  %v2160_v8 = vld [vmem:[%s3068_s3 + $0x28] sm:$0xff] }
   0x2   :  { %v2170_v1 = vld [vmem:[%s3068_s3 + $0x78] sm:$0xff]  ;;  %472 = vmatpush.bf16.msra.mxu0 %v2162_v0  ;;  %v2169_v5 = vld [vmem:[%s3068_s3 + $0x70] sm:$0xff]  ;;  %v2168_v9 = vld [vmem:[%s3068_s3 + $0x68] sm:$0xff] }
   0x3   :  { %v2178_v2 = vld [vmem:[%s3068_s3 + $0xb8] sm:$0xff]  ;;  %486 = vmatpush.bf16.msra.mxu1 %v2170_v1  ;;  %v2177_v6 = vld [vmem:[%s3068_s3 + $0xb0] sm:$0xff]  ;;  %v2176_v10 = vld [vmem:[%s3068_s3 + $0xa8] sm:$0xff] }
   0x4   :  { %v2186_v3 = vld [vmem:[%s3068_s3 + $0xf8] sm:$0xff]  ;;  %500 = vmatpush.bf16.msra.mxu2 %v2178_v2  ;;  %v2185_v7 = vld [vmem:[%s3068_s3 + $0xf0] sm:$0xff]  ;;  %v2184_v11 = vld [vmem:[%s3068_s3 + $0xe8] sm:$0xff] }
   0x5   :  { %514 = vmatpush.bf16.msra.mxu3 %v2186_v3  ;;  %v2159_v12 = vld [vmem:[%s3068_s3 + $0x20] sm:$0xff]  ;;  %v2158_v16 = vld [vmem:[%s3068_s3 + $0x18] sm:$0xff] }
   0x6   :  { %473 = vmatpush.bf16.msra.mxu0 %v2161_v4  ;;  %v2167_v13 = vld [vmem:[%s3068_s3 + $0x60] sm:$0xff]  ;;  %v2166_v17 = vld [vmem:[%s3068_s3 + $0x58] sm:$0xff] }
   0x7   :  { %487 = vmatpush.bf16.msra.mxu1 %v2169_v5  ;;  %v2175_v14 = vld [vmem:[%s3068_s3 + $0xa0] sm:$0xff]  ;;  %v2174_v18 = vld [vmem:[%s3068_s3 + $0x98] sm:$0xff] }
   0x8   :  { %501 = vmatpush.bf16.msra.mxu2 %v2177_v6  ;;  %v2183_v15 = vld [vmem:[%s3068_s3 + $0xe0] sm:$0xff]  ;;  %v2182_v19 = vld [vmem:[%s3068_s3 + $0xd8] sm:$0xff] }
   0x9   :  { %515 = vmatpush.bf16.msra.mxu3 %v2185_v7 }
   0xa   :  { %474 = vmatpush.bf16.msra.mxu0 %v2160_v8 }
   0xb   :  { %488 = vmatpush.bf16.msra.mxu1 %v2168_v9 }
   0xc   :  { %502 = vmatpush.bf16.msra.mxu2 %v2176_v10 }
   0xd   :  { %516 = vmatpush.bf16.msra.mxu3 %v2184_v11 }
   0xe   :  { %475 = vmatpush.bf16.msra.mxu0 %v2159_v12 }
   0xf   :  { %489 = vmatpush.bf16.msra.mxu1 %v2167_v13 }
  0x10   :  { %503 = vmatpush.bf16.msra.mxu2 %v2175_v14 }
  0x11   :  { %517 = vmatpush.bf16.msra.mxu3 %v2183_v15 }
  0x12   :  { %20 = vsyncpa [#allocation5], 0  ;;  %476 = vmatpush.bf16.msra.mxu0 %v2158_v16  ;;  %v2157_v20 = vld [vmem:[%s3068_s3 + $0x10] sm:$0xff]  ;;  %v2156_v24 = vld [vmem:[%s3068_s3 + $0x8] sm:$0xff]  ;;  %vm558_vm0 = vcmask 261120   ;;  %s2361_s20 = smov 112  }
  0x13   :  { %490 = vmatpush.bf16.msra.mxu1 %v2166_v17  ;;  %v2165_v21 = vld [vmem:[%s3068_s3 + $0x50] sm:$0xff]  ;;  %v2164_v25 = vld [vmem:[%s3068_s3 + $0x48] sm:$0xff]  ;;  %v2155_v28 = vld [vmem:[%s3068_s3] sm:$0xff]  ;;  %s2362_s21 = smov 96   ;;  %vm665_vm8 = vcmask 130048   ;;  %s2365_s30 = smov [#allocation2]  }
  0x14   :  { %504 = vmatpush.bf16.msra.mxu2 %v2174_v18  ;;  %v2173_v22 = vld [vmem:[%s3068_s3 + $0x90] sm:$0xff]  ;;  %v2172_v26 = vld [vmem:[%s3068_s3 + $0x88] sm:$0xff]  ;;  %v2163_v29 = vld [vmem:[%s3068_s3 + $0x40] sm:$0xff]  ;;  %s1775_s14 = sshll.u32 %s2365_s30, 4  ;;  %s2366_s17 = smov [#allocation4]   ;;  %s1776_s14 = int_to_ptr.vmem [resolvable:$true] %s1775_s14 }
  0x15   :  { %518 = vmatpush.bf16.msra.mxu3 %v2182_v19  ;;  %v2181_v23 = vld [vmem:[%s3068_s3 + $0xd0] sm:$0xff]  ;;  %v2180_v27 = vld [vmem:[%s3068_s3 + $0xc8] sm:$0xff]  ;;  %v1804_v30 = vld [vmem:[%s3065_s0] sm:$0xf]  ;;  %s1786_s18 = sshll.u32 %s2366_s17, 4  ;;  %s1788_s23 = sshll.u32 %s3078_s13, 4  ;;  %s1787_s18 = int_to_ptr.vmem [resolvable:$true] %s1786_s18  ;;  %s1789_s23 = int_to_ptr.hbm [resolvable:$true] %s1788_s23 }
  0x16   :  { %477 = vmatpush.bf16.msra.mxu0 %v2157_v20  ;;  %v2152_v31 = vld [vmem:[%s3065_s0 + $0x14] sm:$0xf0]  ;;  %v2149_v32 = vld [vmem:[%s3065_s0 + $0x4] sm:$0xf]  ;;  %v1806_v33 = vld [vmem:[%s3065_s0 + $0x18] sm:$0xf0] }
  0x17   :  { %491 = vmatpush.bf16.msra.mxu1 %v2165_v21  ;;  %v2194_v34 = vld [vmem:[%s3068_s3 + $0x138] sm:$0xff]  ;;  %v2171_v36 = vld [vmem:[%s3068_s3 + $0x80] sm:$0xff]  ;;  %v1812_v38 = vld [vmem:[%s3065_s0 + $0x8] sm:$0xf]  ;;  %v1805_v40 = vor.u32 %v2152_v31, %v1804_v30  ;;  %v1809_v43 = vor.u32 %v2149_v32, %v1806_v33  ;;  %v2360_v30 = vmov 32.0  }
  0x18   :  { %505 = vmatpush.bf16.msra.mxu2 %v2173_v22  ;;  %v2202_v35 = vld [vmem:[%s3068_s3 + $0x178] sm:$0xff]  ;;  %v2179_v37 = vld [vmem:[%s3068_s3 + $0xc0] sm:$0xff]  ;;  %v2150_v41 = vld [vmem:[%s3065_s0 + $0xc] sm:$0xf]  ;;  %2240 = vrcp.f32 %v2360_v30 }
  0x19   :  { %519 = vmatpush.bf16.msra.mxu3 %v2181_v23  ;;  %v2153_v39 = vld [vmem:[%s3065_s0 + $0x1c] sm:$0xf0]  ;;  %v1814_v42 = vld [vmem:[%s3065_s0 + $0x20] sm:$0xf0]  ;;  %v2193_v44 = vld [vmem:[%s3068_s3 + $0x130] sm:$0xff] }
  0x1a   :  { %478 = vmatpush.bf16.msra.mxu0 %v2156_v24  ;;  %v2201_v45 = vld [vmem:[%s3068_s3 + $0x170] sm:$0xff]  ;;  %v1813_v46 = vor.u32 %v2153_v39, %v1812_v38  ;;  %v1817_v47 = vor.u32 %v2150_v41, %v1814_v42  ;;  %v2192_v48 = vld [vmem:[%s3068_s3 + $0x128] sm:$0xff]  ;;  %v2191_v50 = vld [vmem:[%s3068_s3 + $0x120] sm:$0xff] }
  0x1b   :  { %492 = vmatpush.bf16.msra.mxu1 %v2164_v25  ;;  %v2200_v49 = vld [vmem:[%s3068_s3 + $0x168] sm:$0xff]  ;;  %v2199_v51 = vld [vmem:[%s3068_s3 + $0x160] sm:$0xff]  ;;  %v2190_v52 = vld [vmem:[%s3068_s3 + $0x118] sm:$0xff] }
  0x1c   :  { %506 = vmatpush.bf16.msra.mxu2 %v2172_v26  ;;  %v2198_v53 = vld [vmem:[%s3068_s3 + $0x158] sm:$0xff]  ;;  %v2189_v54 = vld [vmem:[%s3068_s3 + $0x110] sm:$0xff]  ;;  %v2188_v56 = vld [vmem:[%s3068_s3 + $0x108] sm:$0xff] }
  0x1d   :  { %520 = vmatpush.bf16.msra.mxu3 %v2180_v27  ;;  %v2197_v55 = vld [vmem:[%s3068_s3 + $0x150] sm:$0xff]  ;;  %v2196_v57 = vld [vmem:[%s3068_s3 + $0x148] sm:$0xff]  ;;  %v2187_v58 = vld [vmem:[%s3068_s3 + $0x100] sm:$0xff] }
  0x1e   :  { %479 = vmatpush.bf16.msra.mxu0 %v2155_v28  ;;  %v2195_v59 = vld [vmem:[%s3068_s3 + $0x140] sm:$0xff]  ;;  %v1820_v60 = vld [vmem:[%s3065_s0 + $0x10] sm:$0xf]  ;;  %v2154_v61 = vld [vmem:[%s3065_s0 + $0x24] sm:$0xf0]  ;;  %v2241_v31 = vpop.eup %2240 }
  0x1f   :  { %493 = vmatpush.bf16.msra.mxu1 %v2163_v29  ;;  %v2151_v62 = vld [vmem:[%s3065_s0 + $0x14] sm:$0xf]  ;;  %v1822_v63 = vld [vmem:[%s3065_s0 + $0x28] sm:$0xf0]  ;;  %v1821_v0 = vor.u32 %v2154_v61, %v1820_v60  ;;  %v152_v4 = vld [vmem:[%s3066_s1] sm:$0xff]  ;;  %v566_v32 = vmul.f32 32.0, %v2241_v31  ;;  %vm570_vm1 = vweird.f32 %v2241_v31 }
  0x20   :  { %507 = vmatpush.bf16.msra.mxu2 %v2171_v36  ;;  %v1825_v1 = vor.u32 %v2151_v62, %v1822_v63  ;;  %v153_v8 = vld [vmem:[%s3066_s1 + $0x8] sm:$0xff]  ;;  %s2363_s0 = smov 64  }
  0x21   :  { %521 = vmatpush.bf16.msra.mxu3 %v2179_v37  ;;  %480 = vmatmul.bf16.vlgmr.msra.gmra.mxu0 %v1805_v40  ;;  %v567_v33 = vsub.f32 1.0, %v566_v32  ;;  %v2667_v32 = vld [vmem:[%s3067_s2] sm:$0xff] }
  0x22   :  { %528 = vmatpush.bf16.msrb.mxu0 %v2194_v34  ;;  %494 = vmatmul.bf16.vlgmr.msra.gmra.mxu1 %v1809_v43 }
  0x23   :  { %542 = vmatpush.bf16.msrb.mxu1 %v2202_v35  ;;  %508 = vmatmul.bf16.vlgmr.msra.gmra.mxu2 %v1813_v46  ;;  %v568_v34 = vmul.f32 %v2241_v31, %v567_v33 }
  0x24   :  { %522 = vmatmul.bf16.vlgmr.msra.gmra.mxu3 %v1817_v47  ;;  %v2204_v47 = vld [vmem:[%s3069_s4 + $0x8] sm:$0xff] }
  0x25   :  { %v569_v35 = vadd.f32 %v2241_v31, %v568_v34  ;;  %641 = vmatpush.bf16.msrb.mxu2 %v2204_v47 }
  0x26   :  { %529 = vmatpush.bf16.msrb.mxu0 %v2193_v44 }
  0x27   :  { %543 = vmatpush.bf16.msrb.mxu1 %v2201_v45  ;;  %v2631_v36 = vsel %vm570_vm1, %v2241_v31, %v569_v35 }
  0x2a   :  { %530 = vmatpush.bf16.msrb.mxu0 %v2192_v48 }
  0x2b   :  { %544 = vmatpush.bf16.msrb.mxu1 %v2200_v49  ;;  %v2203_v49 = vld [vmem:[%s3069_s4] sm:$0xff] }
  0x2c   :  { %642 = vmatpush.bf16.msrb.mxu2 %v2203_v49 }
  0x2e   :  { %531 = vmatpush.bf16.msrb.mxu0 %v2191_v50 }
  0x2f   :  { %545 = vmatpush.bf16.msrb.mxu1 %v2199_v51 }
  0x32   :  { %532 = vmatpush.bf16.msrb.mxu0 %v2190_v52 }
  0x33   :  { %546 = vmatpush.bf16.msrb.mxu1 %v2198_v53 }
  0x36   :  { %533 = vmatpush.bf16.msrb.mxu0 %v2189_v54 }
  0x37   :  { %547 = vmatpush.bf16.msrb.mxu1 %v2197_v55 }
  0x3a   :  { %534 = vmatpush.bf16.msrb.mxu0 %v2188_v56 }
  0x3b   :  { %548 = vmatpush.bf16.msrb.mxu1 %v2196_v57 }
  0x3e   :  { %535 = vmatpush.bf16.msrb.mxu0 %v2187_v58 }
  0x3f   :  { %549 = vmatpush.bf16.msrb.mxu1 %v2195_v59 }
  0x41   :  { %536 = vmatmul.bf16.vlgmr.msrb.gmra.mxu0 %v1821_v0 }
  0x42   :  { %550 = vmatmul.bf16.vlgmr.msrb.gmra.mxu1 %v1825_v1 }
  0x9e   :  { %v481_v2 = vpop.f32.mrf.mxu0 }
  0x9f   :  { %v495_v3 = vpop.f32.mrf.mxu1  ;;  %v482_v5 = vadd.f32 %v481_v2, %v152_v4 }
  0xa1   :  { %v496_v7 = vadd.f32 %v495_v3, %v482_v5  ;;  %v556_v5 = vld [vmem:[%s3073_s8] ss:$0 sm:$0xff] }
  0xa6   :  { %v509_v6 = vpop.f32.mrf.mxu2  ;;  %v483_v9 = vpop.f32.mrf.mxu0 }
  0xa7   :  { %v497_v10 = vpop.f32.mrf.mxu1  ;;  %v523_v11 = vpop.f32.mrf.mxu3  ;;  %v510_v12 = vadd.f32 %v509_v6, %v496_v7  ;;  %v484_v13 = vadd.f32 %v483_v9, %v153_v8  ;;  %v557_v9 = vld [vmem:[%s3073_s8 + $0x1] ss:$0 sm:$0xff] }
  0xa9   :  { %v524_v14 = vadd.f32 %v523_v11, %v510_v12  ;;  %v498_v15 = vadd.f32 %v497_v10, %v484_v13 }
  0xae   :  { %v511_v16 = vpop.f32.mrf.mxu2 }
  0xaf   :  { %v512_v20 = vadd.f32 %v511_v16, %v498_v15  ;;  %v525_v22 = vpop.f32.mrf.mxu3  ;;  %v619_v15 = vld [vmem:[%s3073_s8 + $0x2] ss:$0 sm:$0xff] }
  0xb1   :  { %v526_v24 = vadd.f32 %v525_v22, %v512_v20 }
  0xbe   :  { %v537_v17 = vpop.f32.mrf.mxu0 }
  0xbf   :  { %v551_v18 = vpop.f32.mrf.mxu1  ;;  %v538_v19 = vadd.f32 %v537_v17, %v524_v14 }
  0xc1   :  { %v2623_v21 = vadd.f32 %v551_v18, %v538_v19 }
  0xc3   :  { %v559_v23 = vsel %vm558_vm0, %v2623_v21, 0.0 }
  0xc4   :  { %560 = vadd.xlane.f32.xlu0 %v559_v23 }
  0xc6   :  { %v539_v25 = vpop.f32.mrf.mxu0 }
  0xc7   :  { %v540_v26 = vadd.f32 %v539_v25, %v526_v24  ;;  %v553_v27 = vpop.f32.mrf.mxu1 }
  0xc9   :  { %v2627_v28 = vadd.f32 %v553_v27, %v540_v26 }
  0xcb   :  { %v562_v29 = vsel %vm558_vm0, %v2627_v28, 0.0 }
  0xcc   :  { %563 = vadd.xlane.f32.xlu0 %v562_v29 }
 0x137   :  { %v561_v37 = vpop.xlane.xlu0 %560 }
 0x138   :  { %v572_v38 = vmul.f32 %v2631_v36, %v561_v37 }
 0x13a   :  { %v574_v39 = vsub.f32 %v2623_v21, %v572_v38  ;;  %v2674_v38 = vld [vmem:[%s3067_s2 + $0x8] sm:$0xff] }
 0x13c   :  { %v576_v40 = vmul.f32 %v574_v39, %v574_v39 }
 0x13e   :  { %v578_v41 = vsel %vm558_vm0, %v576_v40, 0.0 }
 0x13f   :  { %579 = vadd.xlane.f32.xlu1 %v578_v41  ;;  %v564_v42 = vpop.xlane.xlu0 %563 }
 0x140   :  { %v573_v43 = vmul.f32 %v2631_v36, %v564_v42 }
 0x142   :  { %v575_v44 = vsub.f32 %v2627_v28, %v573_v43  ;;  %v2681_v43 = vld [vmem:[%s3067_s2 + $0x10] sm:$0xff] }
 0x144   :  { %v577_v45 = vmul.f32 %v575_v44, %v575_v44 }
 0x146   :  { %v581_v46 = vsel %vm558_vm0, %v577_v45, 0.0 }
 0x147   :  { %582 = vadd.xlane.f32.xlu1 %v581_v46 }
 0x1b2   :  { %v580_v48 = vpop.xlane.xlu1 %579 }
 0x1b3   :  { %v584_v50 = vmul.f32 %v580_v48, %v2631_v36  ;;  %v2688_v48 = vld [vmem:[%s3067_s2 + $0x18] sm:$0xff] }
 0x1b5   :  { %v586_v51 = vadd.f32 1e-12, %v584_v50 }
 0x1b7   :  { %2242 = vrsqrt.f32 %v586_v51  ;;  %vm594_vm3 = vweird.f32 %v586_v51 }
 0x1ba   :  { %v583_v52 = vpop.xlane.xlu1 %582 }
 0x1bb   :  { %v585_v53 = vmul.f32 %v583_v52, %v2631_v36 }
 0x1bd   :  { %v2243_v54 = vpop.eup %2242  ;;  %v587_v55 = vadd.f32 1e-12, %v585_v53 }
 0x1be   :  { %v589_v56 = vmul.f32 %v2243_v54, %v586_v51  ;;  %vm595_vm2 = vweird.f32 %v2243_v54 }
 0x1bf   :  { %2244 = vrsqrt.f32 %v587_v55  ;;  %vm596_vm4 = vmor %vm594_vm3, %vm595_vm2  ;;  %vm604_vm6 = vweird.f32 %v587_v55 }
 0x1c0   :  { %v590_v57 = vmul.f32 %v2243_v54, %v589_v56 }
 0x1c2   :  { %v591_v58 = vmul.f32 0.5, %v590_v57 }
 0x1c4   :  { %v592_v59 = vsub.f32 1.5, %v591_v58 }
 0x1c5   :  { %v2245_v60 = vpop.eup %2244 }
 0x1c6   :  { %v593_v61 = vmul.f32 %v2243_v54, %v592_v59  ;;  %v599_v62 = vmul.f32 %v2245_v60, %v587_v55  ;;  %vm605_vm5 = vweird.f32 %v2245_v60 }
 0x1c7   :  { %vm606_vm7 = vmor %vm604_vm6, %vm605_vm5 }
 0x1c8   :  { %v600_v63 = vmul.f32 %v2245_v60, %v599_v62  ;;  %v597_v0 = vsel %vm596_vm4, %v2243_v54, %v593_v61 }
 0x1c9   :  { %v608_v3 = vmul.f32 %v597_v0, %v574_v39 }
 0x1ca   :  { %v601_v1 = vmul.f32 0.5, %v600_v63 }
 0x1cb   :  { %v610_v8 = vmul.f32 %v608_v3, %v556_v5 }
 0x1cc   :  { %v602_v2 = vsub.f32 1.5, %v601_v1 }
 0x1cd   :  { %v612_v11 = vadd.f32 %v610_v8, %v557_v9 }
 0x1ce   :  { %v603_v4 = vmul.f32 %v2245_v60, %v602_v2 }
 0x1d0   :  { %v607_v6 = vsel %vm606_vm7, %v2245_v60, %v603_v4 }
 0x1d1   :  { %v609_v7 = vmul.f32 %v607_v6, %v575_v44 }
 0x1d3   :  { %v611_v10 = vmul.f32 %v609_v7, %v556_v5 }
 0x1d5   :  { %v613_v12 = vadd.f32 %v611_v10, %v557_v9 }
 0x1d7   :  { %v614_v13 = vpack.c.bf16 %v613_v12, %v612_v11 }
 0x1d9   :  { %2026 = vmatmul.msk.bf16.vlgmr.msrb.gmra.mxu2 %vm558_vm0, %v614_v13 }
 0x25c   :  { %v644_v14 = vpop.f32.mrf.mxu2 }
 0x25d   :  { %v645_v17 = vadd.f32 %v644_v14, %v619_v15 }
 0x264   :  { %v646_v16 = vpop.f32.mrf.mxu2 }
 0x265   :  { %v647_v18 = vadd.f32 %v646_v16, %v619_v15 }
 0x267   :  { %v657_v19 = vpack.c.bf16 %v647_v18, %v645_v17  ;;  %v2230_v20 = vpack.i.bf16 %v647_v18, %v645_v17 }
 0x269   :  { %2231 = vrot.lane.b32.xlu2 %v2230_v20, %s2361_s20  ;;  %661 = vrot.lane.b32.xlu0 %v657_v19, %s2362_s21 }
 0x2c3   :  { %v2232_v22 = vpop.permute.xlu2 %2231 }
 0x2c4   :  { %v2234_v23 = vunpack.i.h.bf16 %v2232_v22  ;;  %v2233_v24 = vunpack.i.l.bf16 %v2232_v22 }
 0x2c6   :  { %v658_v25 = vpack.c.bf16 %v2234_v23, %v2233_v24 }
 0x2c8   :  { %663 = vrot.lane.b32.xlu2 %v658_v25, %s2362_s21 }
 0x2db   :  { %v662_v29 = vpop.permute.xlu0 %661 }
 0x2dc   :  { %v673_v30 = vsel %vm665_vm8, %v662_v29, 0 }
 0x322   :  { %v664_v26 = vpop.permute.xlu2 %663 }
 0x323   :  { %v676_v27 = vsel %vm665_vm8, %v664_v26, 0 }
 0x324   :  { %684 = vmatpush.bf16.xpose.msrb.mxu3 %v676_v27 }
 0x32c   :  { %685 = vmatpush.bf16.xpose.msrb.mxu3 %v673_v30  ;;  %v2206_v30 = vld [vmem:[%s3070_s5 + $0x8] sm:$0xff] }
 0x333   :  { %2027 = vmatmul.msk.bf16.vlgmr.msrb.gmra.mxu3 %vm665_vm8, %v657_v19 }
 0x343   :  { %2028 = vmatmul.msk.bf16.gmra.mxu3 %vm665_vm8, %v658_v25 }
 0x3b6   :  { %v687_v31 = vpop.f32.mrf.mxu3 }
 0x3b7   :  { %v697_v33 = vmul.f32 0.25, %v687_v31 }
 0x3b9   :  { %v701_v34 = vadd.f32 %v697_v33, %v2667_v32 }
 0x3bb   :  { %v705_v35 = vsel %vm558_vm0, %v701_v34, -inf }
 0x3bc   :  { %706 = vmax.xlane.f32.xlu1 %v705_v35 }
 0x3be   :  { %v689_v37 = vpop.f32.mrf.mxu3 }
 0x3bf   :  { %v698_v39 = vmul.f32 0.25, %v689_v37 }
 0x3c1   :  { %v702_v40 = vadd.f32 %v698_v39, %v2674_v38 }
 0x3c3   :  { %v708_v41 = vsel %vm558_vm0, %v702_v40, -inf }
 0x3c4   :  { %709 = vmax.xlane.f32.xlu2 %v708_v41 }
 0x3c6   :  { %v692_v42 = vpop.f32.mrf.mxu3 }
 0x3c7   :  { %v699_v44 = vmul.f32 0.25, %v692_v42 }
 0x3c9   :  { %v703_v45 = vadd.f32 %v699_v44, %v2681_v43 }
 0x3cb   :  { %v711_v46 = vsel %vm558_vm0, %v703_v45, -inf }
 0x3cc   :  { %712 = vmax.xlane.f32.xlu1 %v711_v46 }
 0x3ce   :  { %v694_v47 = vpop.f32.mrf.mxu3 }
 0x3cf   :  { %v700_v49 = vmul.f32 0.25, %v694_v47 }
 0x3d1   :  { %v704_v50 = vadd.f32 %v700_v49, %v2688_v48 }
 0x3d3   :  { %v714_v51 = vsel %vm558_vm0, %v704_v50, -inf }
 0x3d4   :  { %715 = vmax.xlane.f32.xlu1 %v714_v51 }
 0x3dc   :  { %751 = vrot.lane.b32.xlu2 %v657_v19, %s2363_s0 }
 0x42f   :  { %v707_v52 = vpop.xlane.xlu1 %706 }
 0x430   :  { %v717_v53 = vsub.f32 %v701_v34, %v707_v52 }
 0x432   :  { %v721_v54 = vmul.f32 1.442695, %v717_v53 }
 0x434   :  { %2246 = vpow2.f32 %v721_v54 }
 0x437   :  { %v710_v55 = vpop.xlane.xlu2 %709 }
 0x438   :  { %v718_v56 = vsub.f32 %v702_v40, %v710_v55  ;;  %v836_v40 = vld [vmem:[%s3073_s8 + $0x3] ss:$0 sm:$0xff] }
 0x43a   :  { %v2247_v57 = vpop.eup %2246  ;;  %v723_v58 = vmul.f32 1.442695, %v718_v56 }
 0x43b   :  { %v729_v59 = vsel %vm558_vm0, %v2247_v57, 0.0 }
 0x43c   :  { %2248 = vpow2.f32 %v723_v58  ;;  %730 = vadd.xlane.f32.xlu0 %v729_v59 }
 0x43f   :  { %v713_v60 = vpop.xlane.xlu1 %712  ;;  %v752_v14 = vpop.permute.xlu2 %751 }
 0x440   :  { %v719_v4 = vsub.f32 %v703_v45, %v713_v60  ;;  %v2208_v60 = vld [vmem:[%s3071_s6 + $0x8] sm:$0xff] }
 0x442   :  { %v2249_v61 = vpop.eup %2248  ;;  %v725_v5 = vmul.f32 1.442695, %v719_v4 }
 0x443   :  { %v732_v62 = vsel %vm558_vm0, %v2249_v61, 0.0 }
 0x444   :  { %733 = vadd.xlane.f32.xlu1 %v732_v62 }
 0x447   :  { %v716_v63 = vpop.xlane.xlu1 %715 }
 0x448   :  { %v720_v0 = vsub.f32 %v704_v50, %v716_v63  ;;  %v2207_v63 = vld [vmem:[%s3071_s6] sm:$0xff] }
 0x44a   :  { %v727_v1 = vmul.f32 1.442695, %v720_v0 }
 0x44c   :  { %2250 = vpow2.f32 %v727_v1 }
 0x44d   :  { %2252 = vpow2.f32 %v725_v5 }
 0x452   :  { %v2251_v2 = vpop.eup %2250 }
 0x453   :  { %v738_v3 = vsel %vm558_vm0, %v2251_v2, 0.0  ;;  %v2253_v6 = vpop.eup %2252 }
 0x454   :  { %739 = vadd.xlane.f32.xlu0 %v738_v3  ;;  %v735_v7 = vsel %vm558_vm0, %v2253_v6, 0.0 }
 0x45d   :  { %753 = vrot.lane.b32.xlu1 %v658_v25, %s2363_s0  ;;  %v2205_v25 = vld [vmem:[%s3070_s5] sm:$0xff] }
 0x45e   :  { %827 = vmatpush.bf16.msra.mxu3 %v2205_v25 }
 0x462   :  { %916 = vmatpush.bf16.msrb.mxu3 %v2208_v60 }
 0x466   :  { %917 = vmatpush.bf16.msrb.mxu3 %v2207_v63  ;;  %v2210_v63 = vld [vmem:[%s3072_s7 + $0x8] sm:$0xff] }
 0x487   :  { %736 = vadd.xlane.f32.xlu1 %v735_v7 }
 0x4af   :  { %v731_v9 = vpop.xlane.xlu0 %730 }
 0x4b7   :  { %v734_v8 = vpop.xlane.xlu1 %733 }
 0x4b8   :  { %2254 = vrcp.f32 %v734_v8 }
 0x4b9   :  { %2256 = vrcp.f32 %v731_v9 }
 0x4be   :  { %v2255_v10 = vpop.eup %2254 }
 0x4bf   :  { %v2257_v12 = vpop.eup %2256  ;;  %v746_v13 = vmul.f32 %v2255_v10, %v2249_v61 }
 0x4c0   :  { %v745_v15 = vmul.f32 %v2257_v12, %v2247_v57 }
 0x4c2   :  { %v749_v16 = vpack.c.bf16 %v746_v13, %v745_v15 }
 0x4c7   :  { %v740_v17 = vpop.xlane.xlu0 %739 }
 0x4c8   :  { %2258 = vrcp.f32 %v740_v17  ;;  %v839_v17 = vld [vmem:[%s3073_s8 + $0x4] ss:$0 sm:$0xff] }
 0x4ce   :  { %v2259_v19 = vpop.eup %2258 }
 0x4cf   :  { %v754_v11 = vpop.permute.xlu1 %753  ;;  %v748_v23 = vmul.f32 %v2259_v19, %v2251_v2 }
 0x4d0   :  { %769 = vmatpush.bf16.msra.mxu2 %v754_v11 }
 0x4d4   :  { %770 = vmatpush.bf16.msra.mxu2 %v752_v14 }
 0x4d7   :  { %2029 = vmatmul.msk.bf16.vlgmr.msra.gmra.mxu2 %vm558_vm0, %v749_v16 }
 0x4d8   :  { %804 = vmatpush.bf16.msrb.mxu2 %v2206_v30 }
 0x4fa   :  { %v737_v18 = vpop.xlane.xlu1 %736 }
 0x4fb   :  { %2260 = vrcp.f32 %v737_v18 }
 0x501   :  { %v2261_v20 = vpop.eup %2260 }
 0x502   :  { %v747_v22 = vmul.f32 %v2261_v20, %v2253_v6 }
 0x504   :  { %v750_v24 = vpack.c.bf16 %v748_v23, %v747_v22  ;;  %v840_v23 = vld [vmem:[%s3073_s8 + $0x5] ss:$0 sm:$0xff] }
 0x506   :  { %2030 = vmatmul.msk.bf16.gmra.mxu2 %vm558_vm0, %v750_v24 }
 0x55a   :  { %v772_v26 = vpop.f32.mrf.mxu2 }
 0x562   :  { %v774_v27 = vpop.f32.mrf.mxu2 }
 0x563   :  { %v786_v29 = vpack.c.bf16 %v774_v27, %v772_v26 }
 0x565   :  { %2040 = vmatmul.msk.bf16.vlgmr.msra.gmra.mxu3 %vm665_vm8, %v786_v29  ;;  %v894_v29 = vld [vmem:[%s3073_s8 + $0x6] ss:$0 sm:$0xff] }
 0x589   :  { %v777_v31 = vpop.f32.mrf.mxu2 }
 0x591   :  { %v779_v33 = vpop.f32.mrf.mxu2 }
 0x592   :  { %v787_v34 = vpack.c.bf16 %v779_v33, %v777_v31 }
 0x594   :  { %2035 = vmatmul.msk.bf16.vlgmr.msrb.gmra.mxu2 %vm665_vm8, %v787_v34 }
 0x5e8   :  { %v829_v35 = vpop.f32.mrf.mxu3 }
 0x5f0   :  { %v831_v45 = vpop.f32.mrf.mxu3 }
 0x617   :  { %v806_v37 = vpop.f32.mrf.mxu2 }
 0x618   :  { %v830_v39 = vadd.f32 %v829_v35, %v806_v37 }
 0x61a   :  { %v834_v41 = vadd.f32 %v830_v39, %v2623_v21 }
 0x61c   :  { %v2712_v42 = vadd.f32 %v836_v40, %v834_v41 }
 0x61e   :  { %v841_v44 = vsel %vm558_vm0, %v2712_v42, 0.0 }
 0x61f   :  { %842 = vadd.xlane.f32.xlu2 %v841_v44  ;;  %v808_v46 = vpop.f32.mrf.mxu2 }
 0x620   :  { %v832_v47 = vadd.f32 %v831_v45, %v808_v46 }
 0x622   :  { %v835_v49 = vadd.f32 %v832_v47, %v2627_v28 }
 0x624   :  { %v2717_v50 = vadd.f32 %v836_v40, %v835_v49 }
 0x626   :  { %v844_v51 = vsel %vm558_vm0, %v2717_v50, 0.0 }
 0x627   :  { %845 = vadd.xlane.f32.xlu0 %v844_v51 }
 0x692   :  { %v843_v52 = vpop.xlane.xlu2 %842 }
 0x693   :  { %v847_v21 = vmul.f32 %v843_v52, %v2631_v36  ;;  %v2212_v52 = vld [vmem:[%s3072_s7 + $0x18] sm:$0xff] }
 0x694   :  { %1046 = vmatpush.bf16.msra.mxu0 %v2212_v52 }
 0x695   :  { %v849_v53 = vsub.f32 %v2712_v42, %v847_v21 }
 0x697   :  { %v851_v54 = vmul.f32 %v849_v53, %v849_v53 }
 0x699   :  { %v853_v55 = vsel %vm558_vm0, %v851_v54, 0.0 }
 0x69a   :  { %854 = vadd.xlane.f32.xlu0 %v853_v55  ;;  %v846_v56 = vpop.xlane.xlu0 %845 }
 0x69b   :  { %v848_v57 = vmul.f32 %v846_v56, %v2631_v36  ;;  %v2211_v56 = vld [vmem:[%s3072_s7 + $0x10] sm:$0xff] }
 0x69c   :  { %1047 = vmatpush.bf16.msra.mxu0 %v2211_v56 }
 0x69d   :  { %v850_v28 = vsub.f32 %v2717_v50, %v848_v57 }
 0x69f   :  { %v852_v58 = vmul.f32 %v850_v28, %v850_v28 }
 0x6a0   :  { %1048 = vmatpush.bf16.msra.mxu0 %v2210_v63 }
 0x6a1   :  { %v856_v59 = vsel %vm558_vm0, %v852_v58, 0.0 }
 0x6a2   :  { %857 = vadd.xlane.f32.xlu0 %v856_v59 }
 0x70d   :  { %v855_v61 = vpop.xlane.xlu0 %854 }
 0x70e   :  { %v859_v62 = vmul.f32 %v855_v61, %v2631_v36 }
 0x710   :  { %v861_v0 = vadd.f32 1e-12, %v859_v62 }
 0x712   :  { %2262 = vrsqrt.f32 %v861_v0  ;;  %vm869_vm10 = vweird.f32 %v861_v0 }
 0x715   :  { %v858_v1 = vpop.xlane.xlu0 %857 }
 0x716   :  { %v860_v2 = vmul.f32 %v858_v1, %v2631_v36 }
 0x718   :  { %v2263_v3 = vpop.eup %2262  ;;  %v862_v4 = vadd.f32 1e-12, %v860_v2 }
 0x719   :  { %v864_v5 = vmul.f32 %v2263_v3, %v861_v0  ;;  %vm870_vm9 = vweird.f32 %v2263_v3 }
 0x71a   :  { %2264 = vrsqrt.f32 %v862_v4  ;;  %vm871_vm11 = vmor %vm869_vm10, %vm870_vm9  ;;  %vm879_vm13 = vweird.f32 %v862_v4 }
 0x71b   :  { %v865_v6 = vmul.f32 %v2263_v3, %v864_v5 }
 0x71d   :  { %v866_v7 = vmul.f32 0.5, %v865_v6 }
 0x71f   :  { %v867_v8 = vsub.f32 1.5, %v866_v7  ;;  %v2209_v7 = vld [vmem:[%s3072_s7] sm:$0xff] }
 0x720   :  { %v2265_v9 = vpop.eup %2264  ;;  %1049 = vmatpush.bf16.msra.mxu0 %v2209_v7 }
 0x721   :  { %v868_v10 = vmul.f32 %v2263_v3, %v867_v8  ;;  %v874_v11 = vmul.f32 %v2265_v9, %v862_v4  ;;  %vm880_vm12 = vweird.f32 %v2265_v9 }
 0x722   :  { %vm881_vm14 = vmor %vm879_vm13, %vm880_vm12 }
 0x723   :  { %v875_v12 = vmul.f32 %v2265_v9, %v874_v11  ;;  %v872_v13 = vsel %vm871_vm11, %v2263_v3, %v868_v10  ;;  %vm1038_vm11 = vcmask 523264  }
 0x724   :  { %v883_v16 = vmul.f32 %v872_v13, %v849_v53 }
 0x725   :  { %v876_v14 = vmul.f32 0.5, %v875_v12 }
 0x726   :  { %v885_v20 = vmul.f32 %v883_v16, %v839_v17 }
 0x727   :  { %v877_v15 = vsub.f32 1.5, %v876_v14 }
 0x728   :  { %v887_v25 = vadd.f32 %v885_v20, %v840_v23 }
 0x729   :  { %v878_v18 = vmul.f32 %v2265_v9, %v877_v15 }
 0x72b   :  { %v882_v19 = vsel %vm881_vm14, %v2265_v9, %v878_v18 }
 0x72c   :  { %v884_v22 = vmul.f32 %v882_v19, %v850_v28 }
 0x72e   :  { %v886_v24 = vmul.f32 %v884_v22, %v839_v17 }
 0x730   :  { %v888_v26 = vadd.f32 %v886_v24, %v840_v23 }
 0x732   :  { %v889_v27 = vpack.c.bf16 %v888_v26, %v887_v25 }
 0x734   :  { %2049 = vmatmul.msk.bf16.vlgmr.msrb.gmra.mxu3 %vm558_vm0, %v889_v27 }
 0x7b7   :  { %v919_v30 = vpop.f32.mrf.mxu3 }
 0x7b8   :  { %v2745_v31 = vadd.f32 %v919_v30, %v894_v29 }
 0x7ba   :  { %v2748_v33 = vmul.f32 0.70710677, %v2745_v31 }
 0x7bc   :  { %v926_v34 = vand.u32 2147483647, %v2748_v33  ;;  %vm992_vm9 = vcmp.lt.f32.partialorder %v2748_v33, 0.0  ;;  %v1013_v33 = vld [vmem:[%s3073_s8 + $0x7] ss:$0 sm:$0xff] }
 0x7be   :  { %v928_v35 = vmul.f32 0.3275911, %v926_v34  ;;  %v980_v60 = vsub.f32 0.0, %v926_v34 }
 0x7bf   :  { %v921_v37 = vpop.f32.mrf.mxu3 }
 0x7c0   :  { %v930_v39 = vadd.f32 1.0, %v928_v35  ;;  %v2751_v40 = vadd.f32 %v921_v37, %v894_v29  ;;  %v982_v3 = vmul.f32 %v980_v60, %v926_v34 }
 0x7c2   :  { %2266 = vrcp.f32 %v930_v39  ;;  %v2754_v41 = vmul.f32 0.70710677, %v2751_v40  ;;  %v943_v21 = vand.u32 2147483648, %v930_v39  ;;  %v941_v54 = vand.u32 2147483647, %v930_v39 }
 0x7c3   :  { %vm937_vm1 = vweird.f32 %v930_v39  ;;  %v984_v11 = vmul.f32 1.442695, %v982_v3 }
 0x7c4   :  { %v927_v44 = vand.u32 2147483647, %v2754_v41  ;;  %v944_v57 = vor.u32 1.1754944e-38, %v943_v21  ;;  %vm942_vm3 = vcmp.eq.f32.partialorder %v941_v54, 8.507059e+37  ;;  %vm993_vm10 = vcmp.lt.f32.partialorder %v2754_v41, 0.0 }
 0x7c5   :  { %v998_v54 = vmul.f32 0.5, %v2745_v31 }
 0x7c6   :  { %v929_v45 = vmul.f32 0.3275911, %v927_v44  ;;  %v981_v15 = vsub.f32 0.0, %v927_v44 }
 0x7c8   :  { %v2267_v46 = vpop.eup %2266  ;;  %v931_v49 = vadd.f32 1.0, %v929_v45  ;;  %v983_v20 = vmul.f32 %v981_v15, %v927_v44 }
 0x7c9   :  { %v933_v47 = vmul.f32 %v2267_v46, %v930_v39  ;;  %vm938_vm15 = vweird.f32 %v2267_v46 }
 0x7ca   :  { %2268 = vrcp.f32 %v931_v49  ;;  %vm939_vm2 = vmor %vm937_vm1, %vm938_vm15  ;;  %v958_v2 = vand.u32 2147483648, %v931_v49  ;;  %v956_v5 = vand.u32 2147483647, %v931_v49  ;;  %vm952_vm5 = vweird.f32 %v931_v49 }
 0x7cb   :  { %v934_v51 = vsub.f32 1.0, %v933_v47  ;;  %2270 = vpow2.f32 %v984_v11  ;;  %v986_v26 = vmul.f32 1.442695, %v983_v20 }
 0x7cc   :  { %v959_v10 = vor.u32 1.1754944e-38, %v958_v2  ;;  %vm957_vm7 = vcmp.eq.f32.partialorder %v956_v5, 8.507059e+37 }
 0x7cd   :  { %v935_v53 = vmul.f32 %v2267_v46, %v934_v51  ;;  %2272 = vpow2.f32 %v986_v26 }
 0x7cf   :  { %v936_v55 = vadd.f32 %v2267_v46, %v935_v53 }
 0x7d0   :  { %v2269_v28 = vpop.eup %2268 }
 0x7d1   :  { %v940_v58 = vsel %vm939_vm2, %v2267_v46, %v936_v55  ;;  %v948_v61 = vmul.f32 %v2269_v28, %v931_v49  ;;  %vm953_vm4 = vweird.f32 %v2269_v28  ;;  %v2271_v27 = vpop.eup %2270  ;;  %v999_v55 = vmul.f32 0.5, %v2751_v40 }
 0x7d2   :  { %v945_v59 = vsel %vm942_vm3, %v944_v57, %v940_v58  ;;  %vm954_vm6 = vmor %vm952_vm5, %vm953_vm4 }
 0x7d3   :  { %v962_v62 = vmul.f32 1.0614054, %v945_v59  ;;  %v949_v0 = vsub.f32 1.0, %v948_v61  ;;  %v2273_v47 = vpop.eup %2272 }
 0x7d5   :  { %v2050_v1 = vadd.f32 -1.4531521, %v962_v62  ;;  %v950_v4 = vmul.f32 %v2269_v28, %v949_v0 }
 0x7d7   :  { %v966_v6 = vmul.f32 %v2050_v1, %v945_v59  ;;  %v951_v8 = vadd.f32 %v2269_v28, %v950_v4 }
 0x7d9   :  { %v968_v9 = vadd.f32 1.4214138, %v966_v6  ;;  %v955_v12 = vsel %vm954_vm6, %v2269_v28, %v951_v8  ;;  %v2214_v8 = vld [vmem:[%s3069_s4 + $0x18] sm:$0xff] }
 0x7da   :  { %v960_v14 = vsel %vm957_vm7, %v959_v10, %v955_v12  ;;  %1136 = vmatpush.bf16.msra.mxu1 %v2214_v8  ;;  %v2213_v12 = vld [vmem:[%s3069_s4 + $0x10] sm:$0xff] }
 0x7db   :  { %v970_v13 = vmul.f32 %v968_v9, %v945_v59  ;;  %v963_v16 = vmul.f32 1.0614054, %v960_v14 }
 0x7dd   :  { %v2052_v17 = vadd.f32 -0.28449672, %v970_v13  ;;  %v2051_v18 = vadd.f32 -1.4531521, %v963_v16 }
 0x7de   :  { %1137 = vmatpush.bf16.msra.mxu1 %v2213_v12 }
 0x7df   :  { %v974_v19 = vmul.f32 %v2052_v17, %v945_v59  ;;  %v967_v22 = vmul.f32 %v2051_v18, %v960_v14 }
 0x7e1   :  { %v976_v23 = vadd.f32 0.2548296, %v974_v19  ;;  %v969_v24 = vadd.f32 1.4214138, %v967_v22 }
 0x7e3   :  { %v978_v25 = vmul.f32 %v976_v23, %v945_v59  ;;  %v971_v29 = vmul.f32 %v969_v24, %v960_v14 }
 0x7e5   :  { %v988_v30 = vmul.f32 %v2271_v27, %v978_v25  ;;  %v2053_v34 = vadd.f32 -0.28449672, %v971_v29 }
 0x7e7   :  { %v990_v35 = vsub.f32 1.0, %v988_v30  ;;  %v975_v37 = vmul.f32 %v2053_v34, %v960_v14  ;;  %v1058_v34 = vld [vmem:[%s3073_s8 + $0x10] ss:$0 sm:$0xff] }
 0x7e9   :  { %v977_v39 = vadd.f32 0.2548296, %v975_v37  ;;  %v994_v45 = vsub.f32 0.0, %v990_v35 }
 0x7eb   :  { %v979_v46 = vmul.f32 %v977_v39, %v960_v14  ;;  %v996_v44 = vsel %vm992_vm9, %v994_v45, %v990_v35 }
 0x7ec   :  { %v1000_v21 = vadd.f32 1.0, %v996_v44 }
 0x7ed   :  { %v989_v49 = vmul.f32 %v2273_v47, %v979_v46  ;;  %v1059_v46 = vld [vmem:[%s3073_s8 + $0x11] ss:$0 sm:$0xff] }
 0x7ee   :  { %v1002_v57 = vmul.f32 %v1000_v21, %v998_v54  ;;  %v1114_v21 = vld [vmem:[%s3073_s8 + $0x12] ss:$0 sm:$0xff] }
 0x7ef   :  { %v991_v51 = vsub.f32 1.0, %v989_v49 }
 0x7f1   :  { %v995_v52 = vsub.f32 0.0, %v991_v51 }
 0x7f3   :  { %v997_v53 = vsel %vm993_vm10, %v995_v52, %v991_v51 }
 0x7f4   :  { %v1001_v56 = vadd.f32 1.0, %v997_v53 }
 0x7f6   :  { %v1003_v28 = vmul.f32 %v1001_v56, %v999_v55 }
 0x7f8   :  { %v1004_v58 = vpack.c.bf16 %v1003_v28, %v1002_v57 }
 0x7fa   :  { %2070 = vmatmul.msk.bf16.vlgmr.msra.gmra.mxu0 %vm1038_vm11, %v1004_v58 }
 0x877   :  { %v1051_v59 = vpop.f32.mrf.mxu0 }
 0x878   :  { %v1052_v60 = vadd.f32 %v1051_v59, %v1013_v33 }
 0x87a   :  { %v2778_v41 = vadd.f32 %v1052_v60, %v2712_v42 }
 0x87c   :  { %v1060_v31 = vsel %vm558_vm0, %v2778_v41, 0.0 }
 0x87d   :  { %1061 = vadd.xlane.f32.xlu0 %v1060_v31 }
 0x87f   :  { %v1053_v40 = vpop.f32.mrf.mxu0 }
 0x880   :  { %v1054_v61 = vadd.f32 %v1053_v40, %v1013_v33 }
 0x882   :  { %v2783_v62 = vadd.f32 %v1054_v61, %v2717_v50 }
 0x884   :  { %v1063_v63 = vsel %vm558_vm0, %v2783_v62, 0.0 }
 0x885   :  { %1064 = vadd.xlane.f32.xlu1 %v1063_v63 }
 0x8f0   :  { %v1062_v0 = vpop.xlane.xlu0 %1061 }
 0x8f1   :  { %v1066_v1 = vmul.f32 %v1062_v0, %v2631_v36 }
 0x8f3   :  { %v1068_v2 = vsub.f32 %v2778_v41, %v1066_v1 }
 0x8f5   :  { %v1070_v42 = vmul.f32 %v1068_v2, %v1068_v2 }
 0x8f7   :  { %v1072_v3 = vsel %vm558_vm0, %v1070_v42, 0.0 }
 0x8f8   :  { %v1065_v4 = vpop.xlane.xlu1 %1064  ;;  %1073 = vadd.xlane.f32.xlu0 %v1072_v3 }
 0x8f9   :  { %v1067_v5 = vmul.f32 %v1065_v4, %v2631_v36 }
 0x8fb   :  { %v1069_v6 = vsub.f32 %v2783_v62, %v1067_v5 }
 0x8fd   :  { %v1071_v50 = vmul.f32 %v1069_v6, %v1069_v6 }
 0x8ff   :  { %v1075_v7 = vsel %vm558_vm0, %v1071_v50, 0.0 }
 0x900   :  { %1076 = vadd.xlane.f32.xlu2 %v1075_v7 }
 0x96b   :  { %v1074_v9 = vpop.xlane.xlu0 %1073 }
 0x96c   :  { %v1078_v10 = vmul.f32 %v1074_v9, %v2631_v36 }
 0x96e   :  { %v1080_v11 = vadd.f32 1e-12, %v1078_v10 }
 0x970   :  { %2274 = vrsqrt.f32 %v1080_v11  ;;  %vm1088_vm13 = vweird.f32 %v1080_v11 }
 0x973   :  { %v1077_v13 = vpop.xlane.xlu2 %1076 }
 0x974   :  { %v1079_v14 = vmul.f32 %v1077_v13, %v2631_v36 }
 0x976   :  { %v2275_v15 = vpop.eup %2274  ;;  %v1081_v16 = vadd.f32 1e-12, %v1079_v14 }
 0x977   :  { %v1083_v17 = vmul.f32 %v2275_v15, %v1080_v11  ;;  %vm1089_vm12 = vweird.f32 %v2275_v15 }
 0x978   :  { %2276 = vrsqrt.f32 %v1081_v16  ;;  %vm1090_vm14 = vmor %vm1088_vm13, %vm1089_vm12  ;;  %vm1098_vm1 = vweird.f32 %v1081_v16 }
 0x979   :  { %v1084_v18 = vmul.f32 %v2275_v15, %v1083_v17 }
 0x97b   :  { %v1085_v19 = vmul.f32 0.5, %v1084_v18 }
 0x97d   :  { %v1086_v20 = vsub.f32 1.5, %v1085_v19 }
 0x97e   :  { %v2277_v22 = vpop.eup %2276 }
 0x97f   :  { %v1087_v23 = vmul.f32 %v2275_v15, %v1086_v20  ;;  %v1093_v24 = vmul.f32 %v2277_v22, %v1081_v16  ;;  %vm1099_vm15 = vweird.f32 %v2277_v22 }
 0x980   :  { %vm1100_vm2 = vmor %vm1098_vm1, %vm1099_vm15 }
 0x981   :  { %v1094_v25 = vmul.f32 %v2277_v22, %v1093_v24  ;;  %v1091_v26 = vsel %vm1090_vm14, %v2275_v15, %v1087_v23 }
 0x982   :  { %v1102_v30 = vmul.f32 %v1091_v26, %v1068_v2 }
 0x983   :  { %v1095_v27 = vmul.f32 0.5, %v1094_v25 }
 0x984   :  { %v1104_v39 = vmul.f32 %v1102_v30, %v1058_v34 }
 0x985   :  { %v1096_v29 = vsub.f32 1.5, %v1095_v27 }
 0x986   :  { %v1106_v49 = vadd.f32 %v1104_v39, %v1059_v46 }
 0x987   :  { %v1097_v35 = vmul.f32 %v2277_v22, %v1096_v29 }
 0x989   :  { %v1101_v37 = vsel %vm1100_vm2, %v2277_v22, %v1097_v35 }
 0x98a   :  { %v1103_v45 = vmul.f32 %v1101_v37, %v1069_v6 }
 0x98c   :  { %v1105_v47 = vmul.f32 %v1103_v45, %v1058_v34 }
 0x98e   :  { %v1107_v44 = vadd.f32 %v1105_v47, %v1059_v46 }
 0x990   :  { %v1108_v51 = vpack.c.bf16 %v1107_v44, %v1106_v49 }
 0x992   :  { %2083 = vmatmul.msk.bf16.vlgmr.msra.gmra.mxu1 %vm558_vm0, %v1108_v51 }
 0xa0f   :  { %v1139_v52 = vpop.f32.mrf.mxu1 }
 0xa10   :  { %v1140_v54 = vadd.f32 %v1139_v52, %v1114_v21 }
 0xa17   :  { %v1141_v53 = vpop.f32.mrf.mxu1 }
 0xa18   :  { %v1142_v55 = vadd.f32 %v1141_v53, %v1114_v21 }
 0xa1a   :  { %v2235_v56 = vpack.i.bf16 %v1142_v55, %v1140_v54  ;;  %v2811_v57 = vpack.c.bf16 %v1142_v55, %v1140_v54 }
 0xa1c   :  { %2236 = vrot.lane.b32.xlu1 %v2235_v56, %s2361_s20  ;;  %1156 = vrot.lane.b32.xlu2 %v2811_v57, %s2362_s21 }
 0xa76   :  { %v1157_v40 = vpop.permute.xlu2 %1156 }
 0xa77   :  { %v1167_v61 = vsel %vm665_vm8, %v1157_v40, 0 }
 0xa8e   :  { %v2237_v28 = vpop.permute.xlu1 %2236 }
 0xa8f   :  { %v2239_v58 = vunpack.i.h.bf16 %v2237_v28  ;;  %v2238_v33 = vunpack.i.l.bf16 %v2237_v28  ;;  %v2216_v28 = vld [vmem:[%s3070_s5 + $0x18] sm:$0xff] }
 0xa90   :  { %1299 = vmatpush.bf16.msrb.mxu0 %v2216_v28 }
 0xa91   :  { %v1153_v59 = vpack.c.bf16 %v2239_v58, %v2238_v33 }
 0xa93   :  { %1158 = vrot.lane.b32.xlu0 %v1153_v59, %s2362_s21 }
 0xb05   :  { %v1159_v60 = vpop.permute.xlu0 %1158 }
 0xb06   :  { %v1170_v31 = vsel %vm665_vm8, %v1159_v60, 0 }
 0xb07   :  { %1178 = vmatpush.bf16.xpose.msra.mxu2 %v1170_v31 }
 0xb0f   :  { %1179 = vmatpush.bf16.xpose.msra.mxu2 %v1167_v61 }
 0xb16   :  { %2084 = vmatmul.msk.bf16.vlgmr.msra.gmra.mxu2 %vm665_vm8, %v2811_v57 }
 0xb26   :  { %2085 = vmatmul.msk.bf16.gmra.mxu2 %vm665_vm8, %v1153_v59 }
 0xb99   :  { %v1181_v63 = vpop.f32.mrf.mxu2 }
 0xb9a   :  { %v1191_v0 = vmul.f32 0.25, %v1181_v63 }
 0xb9c   :  { %v1195_v1 = vadd.f32 %v1191_v0, %v2667_v32 }
 0xb9e   :  { %v1199_v2 = vsel %vm558_vm0, %v1195_v1, -inf }
 0xb9f   :  { %1200 = vmax.xlane.f32.xlu0 %v1199_v2 }
 0xba1   :  { %v1183_v42 = vpop.f32.mrf.mxu2 }
 0xba2   :  { %v1192_v3 = vmul.f32 0.25, %v1183_v42 }
 0xba4   :  { %v1196_v4 = vadd.f32 %v1192_v3, %v2674_v38 }
 0xba6   :  { %v1202_v5 = vsel %vm558_vm0, %v1196_v4, -inf }
 0xba7   :  { %1203 = vmax.xlane.f32.xlu1 %v1202_v5 }
 0xba9   :  { %v1186_v6 = vpop.f32.mrf.mxu2 }
 0xbaa   :  { %v1193_v50 = vmul.f32 0.25, %v1186_v6 }
 0xbac   :  { %v1197_v7 = vadd.f32 %v1193_v50, %v2681_v43 }
 0xbae   :  { %v1205_v8 = vsel %vm558_vm0, %v1197_v7, -inf }
 0xbaf   :  { %1206 = vmax.xlane.f32.xlu2 %v1205_v8 }
 0xbb1   :  { %v1188_v9 = vpop.f32.mrf.mxu2 }
 0xbb2   :  { %v1194_v10 = vmul.f32 0.25, %v1188_v9 }
 0xbb4   :  { %v1198_v32 = vadd.f32 %v1194_v10, %v2688_v48 }
 0xbb6   :  { %v1208_v11 = vsel %vm558_vm0, %v1198_v32, -inf }
 0xbb7   :  { %1209 = vmax.xlane.f32.xlu0 %v1208_v11 }
 0xbcb   :  { %1247 = vrot.lane.b32.xlu0 %v1153_v59, %s2363_s0 }
 0xc12   :  { %v1201_v38 = vpop.xlane.xlu0 %1200 }
 0xc13   :  { %v1211_v12 = vsub.f32 %v1195_v1, %v1201_v38  ;;  %v1331_v1 = vld [vmem:[%s3073_s8 + $0x13] ss:$0 sm:$0xff] }
 0xc15   :  { %v1215_v13 = vmul.f32 1.442695, %v1211_v12 }
 0xc17   :  { %2278 = vpow2.f32 %v1215_v13 }
 0xc1a   :  { %v1204_v14 = vpop.xlane.xlu1 %1203 }
 0xc1b   :  { %v1212_v15 = vsub.f32 %v1196_v4, %v1204_v14 }
 0xc1d   :  { %v2279_v16 = vpop.eup %2278  ;;  %v1217_v43 = vmul.f32 1.442695, %v1212_v15  ;;  %v2218_v15 = vld [vmem:[%s3071_s6 + $0x18] sm:$0xff] }
 0xc1e   :  { %v1223_v17 = vsel %vm558_vm0, %v2279_v16, 0.0  ;;  %1412 = vmatpush.bf16.msra.mxu0 %v2218_v15 }
 0xc1f   :  { %2280 = vpow2.f32 %v1217_v43  ;;  %1224 = vadd.xlane.f32.xlu1 %v1223_v17 }
 0xc22   :  { %v1207_v18 = vpop.xlane.xlu2 %1206 }
 0xc23   :  { %v1213_v19 = vsub.f32 %v1197_v7, %v1207_v18  ;;  %v2217_v18 = vld [vmem:[%s3071_s6 + $0x10] sm:$0xff] }
 0xc24   :  { %1413 = vmatpush.bf16.msra.mxu0 %v2217_v18 }
 0xc25   :  { %v2281_v48 = vpop.eup %2280  ;;  %v1219_v20 = vmul.f32 1.442695, %v1213_v19 }
 0xc26   :  { %v1226_v22 = vsel %vm558_vm0, %v2281_v48, 0.0 }
 0xc27   :  { %2282 = vpow2.f32 %v1219_v20  ;;  %1227 = vadd.xlane.f32.xlu2 %v1226_v22 }
 0xc2a   :  { %v1210_v23 = vpop.xlane.xlu0 %1209 }
 0xc2b   :  { %v1214_v24 = vsub.f32 %v1198_v32, %v1210_v23 }
 0xc2d   :  { %v2283_v25 = vpop.eup %2282  ;;  %v1221_v26 = vmul.f32 1.442695, %v1214_v24 }
 0xc2e   :  { %v1229_v27 = vsel %vm558_vm0, %v2283_v25, 0.0 }
 0xc2f   :  { %2284 = vpow2.f32 %v1221_v26  ;;  %1230 = vadd.xlane.f32.xlu2 %v1229_v27 }
 0xc35   :  { %v2285_v29 = vpop.eup %2284 }
 0xc36   :  { %v1232_v30 = vsel %vm558_vm0, %v2285_v29, 0.0 }
 0xc37   :  { %1233 = vadd.xlane.f32.xlu2 %v1232_v30 }
 0xc38   :  { %1245 = vrot.lane.b32.xlu1 %v2811_v57, %s2363_s0  ;;  %v2215_v57 = vld [vmem:[%s3070_s5 + $0x10] sm:$0xff] }
 0xc39   :  { %1322 = vmatpush.bf16.msrb.mxu1 %v2215_v57 }
 0xc3d   :  { %v1248_v34 = vpop.permute.xlu0 %1247 }
 0xc3e   :  { %1263 = vmatpush.bf16.msra.mxu3 %v1248_v34 }
 0xc92   :  { %v1225_v37 = vpop.xlane.xlu1 %1224 }
 0xc9a   :  { %v1228_v35 = vpop.xlane.xlu2 %1227 }
 0xc9b   :  { %2286 = vrcp.f32 %v1228_v35 }
 0xc9c   :  { %2288 = vrcp.f32 %v1225_v37 }
 0xca1   :  { %v2287_v45 = vpop.eup %2286 }
 0xca2   :  { %v1231_v39 = vpop.xlane.xlu2 %1230  ;;  %v2289_v46 = vpop.eup %2288  ;;  %v1240_v47 = vmul.f32 %v2287_v45, %v2281_v48 }
 0xca3   :  { %v1239_v49 = vmul.f32 %v2289_v46, %v2279_v16  ;;  %v1334_v46 = vld [vmem:[%s3073_s8 + $0x14] ss:$0 sm:$0xff] }
 0xca5   :  { %v1243_v51 = vpack.c.bf16 %v1240_v47, %v1239_v49 }
 0xcaa   :  { %v1246_v44 = vpop.permute.xlu1 %1245  ;;  %v1234_v52 = vpop.xlane.xlu2 %1233 }
 0xcab   :  { %1264 = vmatpush.bf16.msra.mxu3 %v1246_v44  ;;  %2290 = vrcp.f32 %v1234_v52  ;;  %v1335_v52 = vld [vmem:[%s3073_s8 + $0x15] ss:$0 sm:$0xff] }
 0xcac   :  { %2292 = vrcp.f32 %v1231_v39 }
 0xcae   :  { %2086 = vmatmul.msk.bf16.vlgmr.msra.gmra.mxu3 %vm558_vm0, %v1243_v51 }
 0xcb1   :  { %v2291_v21 = vpop.eup %2290 }
 0xcb2   :  { %v2293_v53 = vpop.eup %2292  ;;  %v1242_v54 = vmul.f32 %v2291_v21, %v2285_v29 }
 0xcb3   :  { %v1241_v55 = vmul.f32 %v2293_v53, %v2283_v25 }
 0xcb5   :  { %v1244_v56 = vpack.c.bf16 %v1242_v54, %v1241_v55 }
 0xcbe   :  { %2087 = vmatmul.msk.bf16.gmra.mxu3 %vm558_vm0, %v1244_v56  ;;  %v1390_v56 = vld [vmem:[%s3073_s8 + $0x16] ss:$0 sm:$0xff] }
 0xd31   :  { %v1266_v58 = vpop.f32.mrf.mxu3 }
 0xd39   :  { %v1268_v33 = vpop.f32.mrf.mxu3 }
 0xd3a   :  { %v1281_v59 = vpack.c.bf16 %v1268_v33, %v1266_v58 }
 0xd3c   :  { %2101 = vmatmul.msk.bf16.vlgmr.msrb.gmra.mxu1 %vm665_vm8, %v1281_v59 }
 0xd41   :  { %v1271_v60 = vpop.f32.mrf.mxu3 }
 0xd49   :  { %v1273_v31 = vpop.f32.mrf.mxu3 }
 0xd4a   :  { %v1282_v40 = vpack.c.bf16 %v1273_v31, %v1271_v60 }
 0xd4c   :  { %2096 = vmatmul.msk.bf16.vlgmr.msrb.gmra.mxu0 %vm665_vm8, %v1282_v40 }
 0xdb9   :  { %v1324_v61 = vpop.f32.mrf.mxu1 }
 0xdc1   :  { %v1326_v4 = vpop.f32.mrf.mxu1 }
 0xdc9   :  { %v1301_v63 = vpop.f32.mrf.mxu0 }
 0xdca   :  { %v1325_v0 = vadd.f32 %v1324_v61, %v1301_v63 }
 0xdcc   :  { %v1329_v2 = vadd.f32 %v1325_v0, %v2778_v41 }
 0xdce   :  { %v2851_v42 = vadd.f32 %v1331_v1, %v1329_v2 }
 0xdd0   :  { %v1336_v3 = vsel %vm558_vm0, %v2851_v42, 0.0 }
 0xdd1   :  { %1337 = vadd.xlane.f32.xlu0 %v1336_v3  ;;  %v1303_v5 = vpop.f32.mrf.mxu0 }
 0xdd2   :  { %v1327_v6 = vadd.f32 %v1326_v4, %v1303_v5  ;;  %v2222_v5 = vld [vmem:[%s3072_s7 + $0x38] sm:$0xff] }
 0xdd3   :  { %1542 = vmatpush.bf16.msra.mxu1 %v2222_v5 }
 0xdd4   :  { %v1330_v50 = vadd.f32 %v1327_v6, %v2783_v62 }
 0xdd6   :  { %v2856_v7 = vadd.f32 %v1331_v1, %v1330_v50 }
 0xdd8   :  { %v1339_v8 = vsel %vm558_vm0, %v2856_v7, 0.0 }
 0xdd9   :  { %1340 = vadd.xlane.f32.xlu2 %v1339_v8 }
 0xe44   :  { %v1338_v9 = vpop.xlane.xlu0 %1337 }
 0xe45   :  { %v1342_v41 = vmul.f32 %v1338_v9, %v2631_v36 }
 0xe47   :  { %v1344_v10 = vsub.f32 %v2851_v42, %v1342_v41  ;;  %v2221_v41 = vld [vmem:[%s3072_s7 + $0x30] sm:$0xff] }
 0xe48   :  { %1543 = vmatpush.bf16.msra.mxu1 %v2221_v41  ;;  %v1554_v41 = vlaneseq }
 0xe49   :  { %v1346_v32 = vmul.f32 %v1344_v10, %v1344_v10 }
 0xe4b   :  { %v1348_v11 = vsel %vm558_vm0, %v1346_v32, 0.0 }
 0xe4c   :  { %1349 = vadd.xlane.f32.xlu1 %v1348_v11  ;;  %v1341_v38 = vpop.xlane.xlu2 %1340 }
 0xe4d   :  { %v1343_v12 = vmul.f32 %v1341_v38, %v2631_v36 }
 0xe4f   :  { %v1345_v62 = vsub.f32 %v2856_v7, %v1343_v12 }
 0xe51   :  { %v1347_v13 = vmul.f32 %v1345_v62, %v1345_v62 }
 0xe53   :  { %v1351_v14 = vsel %vm558_vm0, %v1347_v13, 0.0 }
 0xe54   :  { %1352 = vadd.xlane.f32.xlu2 %v1351_v14  ;;  %v2220_v14 = vld [vmem:[%s3072_s7 + $0x28] sm:$0xff] }
 0xe55   :  { %1544 = vmatpush.bf16.msra.mxu1 %v2220_v14 }
 0xebf   :  { %v1350_v16 = vpop.xlane.xlu1 %1349 }
 0xec0   :  { %v1354_v43 = vmul.f32 %v1350_v16, %v2631_v36 }
 0xec2   :  { %v1356_v17 = vadd.f32 1e-12, %v1354_v43 }
 0xec4   :  { %2294 = vrsqrt.f32 %v1356_v17  ;;  %vm1364_vm4 = vweird.f32 %v1356_v17 }
 0xec7   :  { %v1353_v19 = vpop.xlane.xlu2 %1352 }
 0xec8   :  { %v1355_v48 = vmul.f32 %v1353_v19, %v2631_v36 }
 0xeca   :  { %v2295_v20 = vpop.eup %2294  ;;  %v1357_v22 = vadd.f32 1e-12, %v1355_v48 }
 0xecb   :  { %v1359_v23 = vmul.f32 %v2295_v20, %v1356_v17  ;;  %vm1365_vm3 = vweird.f32 %v2295_v20 }
 0xecc   :  { %2296 = vrsqrt.f32 %v1357_v22  ;;  %vm1366_vm5 = vmor %vm1364_vm4, %vm1365_vm3  ;;  %vm1374_vm7 = vweird.f32 %v1357_v22 }
 0xecd   :  { %v1360_v24 = vmul.f32 %v2295_v20, %v1359_v23 }
 0xecf   :  { %v1361_v25 = vmul.f32 0.5, %v1360_v24 }
 0xed1   :  { %v1362_v26 = vsub.f32 1.5, %v1361_v25 }
 0xed2   :  { %v2297_v27 = vpop.eup %2296 }
 0xed3   :  { %v1363_v29 = vmul.f32 %v2295_v20, %v1362_v26  ;;  %v1369_v30 = vmul.f32 %v2297_v27, %v1357_v22  ;;  %vm1375_vm6 = vweird.f32 %v2297_v27 }
 0xed4   :  { %vm1376_vm9 = vmor %vm1374_vm7, %vm1375_vm6 }
 0xed5   :  { %v1370_v34 = vmul.f32 %v2297_v27, %v1369_v30  ;;  %v1367_v35 = vsel %vm1366_vm5, %v2295_v20, %v1363_v29  ;;  %v2219_v20 = vld [vmem:[%s3072_s7 + $0x20] sm:$0xff] }
 0xed6   :  { %v1378_v45 = vmul.f32 %v1367_v35, %v1344_v10  ;;  %1545 = vmatpush.bf16.msra.mxu1 %v2219_v20  ;;  %v1612_v20 = vld [vmem:[%s3074_s9 + $0x8] sm:$0xff] }
 0xed7   :  { %v1371_v37 = vmul.f32 0.5, %v1370_v34 }
 0xed8   :  { %v1380_v44 = vmul.f32 %v1378_v45, %v1334_v46 }
 0xed9   :  { %v1372_v39 = vsub.f32 1.5, %v1371_v37 }
 0xeda   :  { %v1382_v53 = vadd.f32 %v1380_v44, %v1335_v52 }
 0xedb   :  { %v1373_v47 = vmul.f32 %v2297_v27, %v1372_v39 }
 0xedd   :  { %v1377_v49 = vsel %vm1376_vm9, %v2297_v27, %v1373_v47 }
 0xede   :  { %v1379_v51 = vmul.f32 %v1377_v49, %v1345_v62 }
 0xee0   :  { %v1381_v21 = vmul.f32 %v1379_v51, %v1334_v46 }
 0xee2   :  { %v1383_v54 = vadd.f32 %v1381_v21, %v1335_v52 }
 0xee4   :  { %v1384_v55 = vpack.c.bf16 %v1383_v54, %v1382_v53 }
 0xee6   :  { %2114 = vmatmul.msk.bf16.vlgmr.msra.gmra.mxu0 %vm558_vm0, %v1384_v55 }
 0xf63   :  { %v1415_v57 = vpop.f32.mrf.mxu0 }
 0xf64   :  { %v2884_v28 = vadd.f32 %v1415_v57, %v1390_v56 }
 0xf66   :  { %v2887_v58 = vmul.f32 0.70710677, %v2884_v28 }
 0xf68   :  { %v1422_v33 = vand.u32 2147483647, %v2887_v58  ;;  %vm1488_vm4 = vcmp.lt.f32.partialorder %v2887_v58, 0.0  ;;  %v1555_v58 = vshrl.u32 %v1554_v41, 7 }
 0xf6a   :  { %v1424_v59 = vmul.f32 0.3275911, %v1422_v33  ;;  %v1476_v12 = vsub.f32 0.0, %v1422_v33 }
 0xf6b   :  { %v1417_v60 = vpop.f32.mrf.mxu0 }
 0xf6c   :  { %v1426_v31 = vadd.f32 1.0, %v1424_v59  ;;  %v2890_v40 = vadd.f32 %v1417_v60, %v1390_v56  ;;  %v1478_v17 = vmul.f32 %v1476_v12, %v1422_v33 }
 0xf6e   :  { %2298 = vrcp.f32 %v1426_v31  ;;  %v2893_v61 = vmul.f32 0.70710677, %v2890_v40  ;;  %v1439_v6 = vand.u32 2147483648, %v1426_v31  ;;  %v1437_v8 = vand.u32 2147483647, %v1426_v31 }
 0xf6f   :  { %vm1433_vm12 = vweird.f32 %v1426_v31  ;;  %v1480_v25 = vmul.f32 1.442695, %v1478_v17  ;;  %v1495_v5 = vmul.f32 0.5, %v2890_v40 }
 0xf70   :  { %v1423_v63 = vand.u32 2147483647, %v2893_v61  ;;  %v1440_v10 = vor.u32 1.1754944e-38, %v1439_v6  ;;  %vm1438_vm14 = vcmp.eq.f32.partialorder %v1437_v8, 8.507059e+37  ;;  %vm1489_vm5 = vcmp.lt.f32.partialorder %v2893_v61, 0.0 }
 0xf71   :  { %v1558_v61 = vmul.u32 8, %v1555_v58  ;;  %v1716_v58 = vld [vmem:[%s3076_s11 + $0xa0] sm:$0xff] }
 0xf72   :  { %v1425_v0 = vmul.f32 0.3275911, %v1423_v63  ;;  %v1477_v30 = vsub.f32 0.0, %v1423_v63 }
 0xf74   :  { %v2299_v1 = vpop.eup %2298  ;;  %v1427_v3 = vadd.f32 1.0, %v1425_v0  ;;  %v1479_v45 = vmul.f32 %v1477_v30, %v1423_v63 }
 0xf75   :  { %v1429_v2 = vmul.f32 %v2299_v1, %v1426_v31  ;;  %vm1434_vm10 = vweird.f32 %v2299_v1 }
 0xf76   :  { %2300 = vrcp.f32 %v1427_v3  ;;  %vm1435_vm13 = vmor %vm1433_vm12, %vm1434_vm10  ;;  %v1454_v43 = vand.u32 2147483648, %v1427_v3  ;;  %v1452_v19 = vand.u32 2147483647, %v1427_v3  ;;  %vm1448_vm1 = vweird.f32 %v1427_v3 }
 0xf77   :  { %v1430_v4 = vsub.f32 1.0, %v1429_v2  ;;  %2302 = vpow2.f32 %v1480_v25  ;;  %v1482_v51 = vmul.f32 1.442695, %v1479_v45 }
 0xf78   :  { %v1455_v24 = vor.u32 1.1754944e-38, %v1454_v43  ;;  %vm1453_vm3 = vcmp.eq.f32.partialorder %v1452_v19, 8.507059e+37 }
 0xf79   :  { %v1431_v50 = vmul.f32 %v2299_v1, %v1430_v4  ;;  %2304 = vpow2.f32 %v1482_v51  ;;  %v1494_v4 = vmul.f32 0.5, %v2884_v28  ;;  %v1640_v51 = vld [vmem:[%s3075_s10] sm:$0xff] }
 0xf7b   :  { %v1432_v9 = vadd.f32 %v2299_v1, %v1431_v50 }
 0xf7c   :  { %v2301_v32 = vpop.eup %2300 }
 0xf7d   :  { %v1436_v11 = vsel %vm1435_vm13, %v2299_v1, %v1432_v9  ;;  %v1444_v62 = vmul.f32 %v2301_v32, %v1427_v3  ;;  %vm1449_vm15 = vweird.f32 %v2301_v32  ;;  %v2303_v52 = vpop.eup %2302 }
 0xf7e   :  { %v1441_v38 = vsel %vm1438_vm14, %v1440_v10, %v1436_v11  ;;  %vm1450_vm2 = vmor %vm1448_vm1, %vm1449_vm15  ;;  %v1557_v11 = vand.u32 127, %v1554_v41  ;;  %v1717_v41 = vld [vmem:[%s3076_s11 + $0xa8] sm:$0xff] }
 0xf7f   :  { %v1458_v13 = vmul.f32 1.0614054, %v1441_v38  ;;  %v1445_v15 = vsub.f32 1.0, %v1444_v62  ;;  %v2305_v60 = vpop.eup %2304 }
 0xf80   :  { %vm1559_vm6 = vcmp.eq.s32.totalorder %v1557_v11, %v1558_v61  ;;  %v1715_v11 = vld [vmem:[%s3076_s11 + $0x98] sm:$0xff]  ;;  %v1615_v61 = vld [vmem:[%s3073_s8 + $0x22] ss:$0 sm:$0xff] }
 0xf81   :  { %v2115_v16 = vadd.f32 -1.4531521, %v1458_v13  ;;  %v1446_v18 = vmul.f32 %v2301_v32, %v1445_v15  ;;  %v2364_v13 = vmov 0.0  }
 0xf82   :  { %v1560_v14 = vsel %vm1559_vm6, 1.0, %v2364_v13  ;;  %v1713_v13 = vld [vmem:[%s3076_s11 + $0x88] sm:$0xff] }
 0xf83   :  { %v1462_v48 = vmul.f32 %v2115_v16, %v1441_v38  ;;  %v1447_v22 = vadd.f32 %v2301_v32, %v1446_v18 }
 0xf85   :  { %v1464_v23 = vadd.f32 1.4214138, %v1462_v48  ;;  %v1451_v26 = vsel %vm1450_vm2, %v2301_v32, %v1447_v22  ;;  %v1510_v32 = vld [vmem:[%s3073_s8 + $0x17] ss:$0 sm:$0xff]  ;;  %v1611_v22 = vld [vmem:[%s3074_s9] sm:$0xff] }
 0xf86   :  { %v1456_v29 = vsel %vm1453_vm3, %v1455_v24, %v1451_v26 }
 0xf87   :  { %v1466_v27 = vmul.f32 %v1464_v23, %v1441_v38  ;;  %v1459_v34 = vmul.f32 1.0614054, %v1456_v29 }
 0xf89   :  { %v2117_v35 = vadd.f32 -0.28449672, %v1466_v27  ;;  %v2116_v37 = vadd.f32 -1.4531521, %v1459_v34 }
 0xf8b   :  { %v1470_v39 = vmul.f32 %v2117_v35, %v1441_v38  ;;  %v1463_v46 = vmul.f32 %v2116_v37, %v1456_v29  ;;  %v1584_v37 = vld [vmem:[%s3073_s8 + $0x20] ss:$0 sm:$0xff] }
 0xf8d   :  { %v1472_v47 = vadd.f32 0.2548296, %v1470_v39  ;;  %v1465_v49 = vadd.f32 1.4214138, %v1463_v46 }
 0xf8f   :  { %v1474_v44 = vmul.f32 %v1472_v47, %v1441_v38  ;;  %v1467_v21 = vmul.f32 %v1465_v49, %v1456_v29  ;;  %v1642_v49 = vld [vmem:[%s3075_s10 + $0x10] sm:$0xff] }
 0xf91   :  { %v1484_v53 = vmul.f32 %v2303_v52, %v1474_v44  ;;  %v2118_v54 = vadd.f32 -0.28449672, %v1467_v21  ;;  %v1643_v44 = vld [vmem:[%s3075_s10 + $0x18] sm:$0xff]  ;;  %v1641_v52 = vld [vmem:[%s3075_s10 + $0x8] sm:$0xff] }
 0xf92   :  { %v1711_v21 = vld [vmem:[%s3076_s11 + $0x78] sm:$0xff] }
 0xf93   :  { %v1486_v55 = vsub.f32 1.0, %v1484_v53  ;;  %v1471_v56 = vmul.f32 %v2118_v54, %v1456_v29  ;;  %v1727_v53 = vld [vmem:[%s3076_s11 + $0xf8] sm:$0xff]  ;;  %v1710_v54 = vld [vmem:[%s3076_s11 + $0x70] sm:$0xff]  ;;  %1729 = vmatpush.msrb.mxu0 %v1711_v21 }
 0xf94   :  { %1749 = vmatpush.msrb.mxu1 %v1727_v53 }
 0xf95   :  { %v1473_v57 = vadd.f32 0.2548296, %v1471_v56  ;;  %v1490_v33 = vsub.f32 0.0, %v1486_v55  ;;  %v1709_v56 = vld [vmem:[%s3076_s11 + $0x68] sm:$0xff]  ;;  %1730 = vmatpush.msrb.mxu0 %v1710_v54 }
 0xf97   :  { %v1475_v59 = vmul.f32 %v1473_v57, %v1456_v29  ;;  %v1492_v63 = vsel %vm1488_vm4, %v1490_v33, %v1486_v55  ;;  %v1726_v55 = vld [vmem:[%s3076_s11 + $0xf0] sm:$0xff]  ;;  %v1725_v57 = vld [vmem:[%s3076_s11 + $0xe8] sm:$0xff]  ;;  %v1708_v33 = vld [vmem:[%s3076_s11 + $0x60] sm:$0xff]  ;;  %1731 = vmatpush.msrb.mxu0 %v1709_v56 }
 0xf98   :  { %v1496_v2 = vadd.f32 1.0, %v1492_v63  ;;  %1750 = vmatpush.msrb.mxu1 %v1726_v55  ;;  %v1706_v63 = vld [vmem:[%s3076_s11 + $0x50] sm:$0xff] }
 0xf99   :  { %v1485_v31 = vmul.f32 %v2305_v60, %v1475_v59  ;;  %v1724_v59 = vld [vmem:[%s3076_s11 + $0xe0] sm:$0xff]  ;;  %v1707_v60 = vld [vmem:[%s3076_s11 + $0x58] sm:$0xff]  ;;  %1732 = vmatpush.msrb.mxu0 %v1708_v33 }
 0xf9a   :  { %v1498_v50 = vmul.f32 %v1496_v2, %v1494_v4  ;;  %1751 = vmatpush.msrb.mxu1 %v1725_v57  ;;  %v1721_v2 = vld [vmem:[%s3076_s11 + $0xc8] sm:$0xff]  ;;  %v1720_v4 = vld [vmem:[%s3076_s11 + $0xc0] sm:$0xff] }
 0xf9b   :  { %v1487_v0 = vsub.f32 1.0, %v1485_v31  ;;  %v1723_v31 = vld [vmem:[%s3076_s11 + $0xd8] sm:$0xff]  ;;  %1733 = vmatpush.msrb.mxu0 %v1707_v60 }
 0xf9c   :  { %1752 = vmatpush.msrb.mxu1 %v1724_v59 }
 0xf9d   :  { %v1491_v1 = vsub.f32 0.0, %v1487_v0  ;;  %1734 = vmatpush.msrb.mxu0 %v1706_v63 }
 0xf9e   :  { %1753 = vmatpush.msrb.mxu1 %v1723_v31 }
 0xf9f   :  { %v1493_v3 = vsel %vm1489_vm5, %v1491_v1, %v1487_v0  ;;  %v1722_v0 = vld [vmem:[%s3076_s11 + $0xd0] sm:$0xff]  ;;  %v1705_v1 = vld [vmem:[%s3076_s11 + $0x48] sm:$0xff] }
 0xfa0   :  { %v1497_v6 = vadd.f32 1.0, %v1493_v3  ;;  %1754 = vmatpush.msrb.mxu1 %v1722_v0  ;;  %v1704_v3 = vld [vmem:[%s3076_s11 + $0x40] sm:$0xff]  ;;  %1735 = vmatpush.msrb.mxu0 %v1705_v1 }
 0xfa2   :  { %v1499_v8 = vmul.f32 %v1497_v6, %v1495_v5  ;;  %1755 = vmatpush.msrb.mxu1 %v1721_v2  ;;  %v1703_v5 = vld [vmem:[%s3076_s11 + $0x38] sm:$0xff]  ;;  %1736 = vmatpush.msrb.mxu0 %v1704_v3 }
 0xfa3   :  { %v1719_v6 = vld [vmem:[%s3076_s11 + $0xb8] sm:$0xff] }
 0xfa4   :  { %v1500_v9 = vpack.c.bf16 %v1499_v8, %v1498_v50  ;;  %1756 = vmatpush.msrb.mxu1 %v1720_v4  ;;  %v1702_v50 = vld [vmem:[%s3076_s11 + $0x30] sm:$0xff]  ;;  %1737 = vmatpush.msrb.mxu0 %v1703_v5 }
 0xfa5   :  { %v1718_v8 = vld [vmem:[%s3076_s11 + $0xb0] sm:$0xff] }
 0xfa6   :  { %2143 = vmatmul.msk.bf16.vlgmr.msra.gmra.mxu1 %vm1038_vm11, %v1500_v9  ;;  %vm1586_vm11 = vcmask 254976   ;;  %v1701_v9 = vld [vmem:[%s3076_s11 + $0x28] sm:$0xff]  ;;  %1738 = vmatpush.msrb.mxu0 %v1702_v50 }
 0xfa7   :  { %1757 = vmatpush.msrb.mxu1 %v1719_v6 }
 0xfa8   :  { %1739 = vmatpush.msrb.mxu0 %v1701_v9 }
 0xfa9   :  { %1758 = vmatpush.msrb.mxu1 %v1718_v8 }
 0xfab   :  { %1759 = vmatpush.msrb.mxu1 %v1717_v41 }
 0xfad   :  { %1760 = vmatpush.msrb.mxu1 %v1716_v58 }
 0xfaf   :  { %1761 = vmatpush.msrb.mxu1 %v1715_v11 }
0x1023   :  { %v1547_v10 = vpop.f32.mrf.mxu1 }
0x1024   :  { %v1548_v12 = vadd.f32 %v1547_v10, %v1510_v32  ;;  %v1700_v10 = vld [vmem:[%s3076_s11 + $0x20] sm:$0xff] }
0x1025   :  { %1740 = vmatpush.msrb.mxu0 %v1700_v10 }
0x1026   :  { %v1552_v62 = vadd.f32 %v1548_v12, %v2851_v42  ;;  %v1614_v42 = vld [vmem:[%s3074_s9 + $0x18] sm:$0xff] }
0x1027   :  { %1631 = vmatpush.msrb.mxu3 %v1614_v42 }
0x102b   :  { %v1549_v38 = vpop.f32.mrf.mxu1 }
0x102c   :  { %v1550_v28 = vadd.f32 %v1549_v38, %v1510_v32  ;;  %v1699_v32 = vld [vmem:[%s3076_s11 + $0x18] sm:$0xff] }
0x102d   :  { %1741 = vmatpush.msrb.mxu0 %v1699_v32 }
0x102e   :  { %v1553_v40 = vadd.f32 %v1550_v28, %v2856_v7  ;;  %v1613_v7 = vld [vmem:[%s3074_s9 + $0x10] sm:$0xff]  ;;  %s1777_s9 = sshll.u32 %s3077_s12, 4  ;;  %s1778_s9 = int_to_ptr.hbm [resolvable:$true] %s1777_s9 }
0x102f   :  { %1632 = vmatpush.msrb.mxu3 %v1613_v7  ;;  %v1698_v28 = vld [vmem:[%s3076_s11 + $0x10] sm:$0xff] }
0x1030   :  { %1578 = vmatpush.msrb.mxu2 %v1553_v40  ;;  %v1714_v40 = vld [vmem:[%s3076_s11 + $0x90] sm:$0xff]  ;;  %1742 = vmatpush.msrb.mxu0 %v1698_v28 }
0x1031   :  { %1633 = vmatpush.msrb.mxu3 %v1612_v20  ;;  %1762 = vmatpush.msrb.mxu1 %v1714_v40 }
0x1032   :  { %1579 = vmatpush.msrb.mxu2 %v1552_v62  ;;  %v1697_v62 = vld [vmem:[%s3076_s11 + $0x8] sm:$0xff] }
0x1033   :  { %2144 = vmatmul.msk.f32.vlgmr.msrb.gmra.mxu2 %vm665_vm8, %v1560_v14  ;;  %1634 = vmatpush.msrb.mxu3 %v1611_v22  ;;  %v1696_v14 = vld [vmem:[%s3076_s11] sm:$0xff] }
0x1034   :  { %1668 = vmatpush.msra.mxu2 %v1642_v49  ;;  %1743 = vmatpush.msrb.mxu0 %v1697_v62  ;;  %v1728_v22 = vld [vmem:[%s3073_s8 + $0x24] ss:$0 sm:$0xff] }
0x1035   :  { %1688 = vmatpush.msra.mxu3 %v1643_v44  ;;  %1763 = vmatpush.msrb.mxu1 %v1713_v13 }
0x1036   :  { %1669 = vmatpush.msra.mxu2 %v1640_v51  ;;  %1744 = vmatpush.msrb.mxu0 %v1696_v14 }
0x1037   :  { %1689 = vmatpush.msra.mxu3 %v1641_v52 }
0x10b6   :  { %v1581_v15 = vpop.f32.mrf.mxu2 }
0x10b7   :  { %v1587_v16 = vsel %vm1586_vm11, %v1581_v15, 0.0 }
0x10b8   :  { %1588 = vadd.xlane.f32.xlu2 %v1587_v16  ;;  %v2146_v16 = vld [vmem:[%s3073_s8 + $0x23] ss:$8 sm:$0x3] }
0x112b   :  { %v1589_v43 = vpop.xlane.xlu2 %1588 }
0x112c   :  { %v1590_v17 = vmul.f32 %v1589_v43, %v2631_v36  ;;  %v1647_v43 = vperm.slane %v2146_v16, 0 }
0x112e   :  { %v1591_v18 = vsub.f32 %v1581_v15, %v1590_v17  ;;  %v1712_v15 = vld [vmem:[%s3076_s11 + $0x80] sm:$0xff]  ;;  %v1648_v17 = vperm.slane %v2146_v16, 1 }
0x112f   :  { %1764 = vmatpush.msrb.mxu1 %v1712_v15 }
0x1130   :  { %v1592_v19 = vmul.f32 %v1591_v18, %v1591_v18 }
0x1132   :  { %v1593_v48 = vsel %vm1586_vm11, %v1592_v19, 0.0 }
0x1133   :  { %1594 = vadd.xlane.f32.xlu2 %v1593_v48 }
0x11a6   :  { %v1595_v23 = vpop.xlane.xlu2 %1594 }
0x11a7   :  { %v1596_v24 = vmul.f32 %v1595_v23, %v2631_v36  ;;  %v1585_v36 = vld [vmem:[%s3073_s8 + $0x21] ss:$0 sm:$0xff] }
0x11a9   :  { %v1597_v25 = vadd.f32 1e-12, %v1596_v24 }
0x11ab   :  { %2306 = vrsqrt.f32 %v1597_v25  ;;  %vm1604_vm9 = vweird.f32 %v1597_v25 }
0x11b1   :  { %v2307_v26 = vpop.eup %2306 }
0x11b2   :  { %v1599_v27 = vmul.f32 %v2307_v26, %v1597_v25  ;;  %vm1605_vm7 = vweird.f32 %v2307_v26 }
0x11b3   :  { %vm1606_vm10 = vmor %vm1604_vm9, %vm1605_vm7 }
0x11b4   :  { %v1600_v29 = vmul.f32 %v2307_v26, %v1599_v27 }
0x11b6   :  { %v1601_v30 = vmul.f32 0.5, %v1600_v29 }
0x11b8   :  { %v1602_v34 = vsub.f32 1.5, %v1601_v30 }
0x11ba   :  { %v1603_v35 = vmul.f32 %v2307_v26, %v1602_v34 }
0x11bc   :  { %v1607_v39 = vsel %vm1606_vm10, %v2307_v26, %v1603_v35 }
0x11bd   :  { %v1608_v45 = vmul.f32 %v1607_v39, %v1591_v18 }
0x11bf   :  { %v1609_v46 = vmul.f32 %v1608_v45, %v1584_v37 }
0x11c1   :  { %v1610_v47 = vadd.f32 %v1609_v46, %v1585_v36 }
0x11c3   :  { %2145 = vmatmul.msk.f32.vlgmr.msrb.gmra.mxu3 %vm558_vm0, %v1610_v47 }
0x1246   :  { %v1636_v38 = vpop.f32.mrf.mxu3 }
0x1247   :  { %v1637_v12 = vadd.f32 %v1636_v38, %v1615_v61 }
0x1249   :  { %1639 = vst [vmem:[#allocation2] sm:$0x3] %v1637_v12  ;;  %2147 = vmatmul.msk.f32.vlgmr.msra.gmra.mxu2 %vm665_vm8, %v1637_v12  ;;  %2148 = vmatmul.msk.f32.vlgmr.msra.gmra.mxu3 %vm665_vm8, %v1637_v12 }
0x124a   :  { %1780 = dma.vmem_to_hbm [thread:$0]  %s1776_s14, 32, %s1778_s9, [#allocation3]  }
0x12cc   :  { %v1671_v18 = vpop.f32.mrf.mxu2  ;;  %v1691_v19 = vpop.f32.mrf.mxu3 }
0x12cd   :  { %v1672_v48 = vadd.f32 %v1671_v18, %v1647_v43  ;;  %v1692_v42 = vadd.f32 %v1691_v19, %v1648_v17 }
0x12cf   :  { %v1694_v7 = vmax.f32 %v1672_v48, 0.0  ;;  %v1695_v20 = vmax.f32 %v1692_v42, 0.0 }
0x12d1   :  { %1745 = vmatmul.f32.vlgmr.msrb.gmra.mxu0 %v1694_v7  ;;  %1765 = vmatmul.f32.vlgmr.msrb.gmra.mxu1 %v1695_v20 }
0x134e   :  { %v1746_v23 = vpop.f32.mrf.mxu0  ;;  %v1766_v25 = vpop.f32.mrf.mxu1 }
0x134f   :  { %v1747_v24 = vadd.f32 %v1746_v23, %v1728_v22 }
0x1351   :  { %v1767_v26 = vadd.f32 %v1766_v25, %v1747_v24 }
0x1353   :  { %1769 = vst [vmem:[#allocation4] sm:$0x3] %v1767_v26 }
0x1354   :  { %1791 = dma.vmem_to_hbm [thread:$0]  %s1787_s18, 32, %s1789_s23, [#allocation5]  }
0x1355   :  { %2356 = dma.done.wait [#allocation3], 32  }
0x1356   :  { %2357 = vsyncadd [#allocation3], 4294967264 }
0x1357   :  { %2358 = dma.done.wait [#allocation5], 32  }
0x1358   :  { %2359 = vsyncadd [#allocation5], 4294967264 }
0x1359   :  { %1800 = vsyncpa [#allocation3], 1 }
0x135a   :  { %1801 = vsyncpa [#allocation5], 1 }

</bundles_post_ra>
